<compile_context>
chip_gen: v7x
topology: tpu7x:2x2x1
jax: 0.10.0
libtpu: 0.0.40
codegen_flags: <defaults>
</compile_context>

<pallas_src>
import numpy as np
import jax
import jax.numpy as jnp
from jax.experimental import pallas as pl
from jax.experimental.pallas import tpu as pltpu


NZ, NGF, NC = 8, 8, 3          # latent dim, base width, output channels
K = 4                          # ConvTranspose kernel size (all layers)

# Sub-pixel taps of ConvTranspose2d(K=4, stride=2, padding=1), per axis:
#   output index o = 2*i - 1 + k   (i = input index, k = kernel tap)
#   even o = 2m  : (di= 0, k=1), (di=-1, k=3)
#   odd  o = 2m+1: (di= 0, k=2), (di=+1, k=0)
TAPS = {0: ((0, 1), (-1, 3)), 1: ((0, 2), (1, 0))}
SHIFTS = tuple((dh, dw) for dh in (-1, 0, 1) for dw in (-1, 0, 1))


# ------------------------- in-kernel helper functions -----------------------

def _shift_cols(x, d):
    """result[:, l] = x[:, l + d] with zeros where l + d is out of range."""
    c, l = x.shape
    if d == 0:
        return x
    if d > 0:
        return jnp.concatenate([x[:, d:], jnp.zeros((c, d), x.dtype)], axis=1)
    return jnp.concatenate([jnp.zeros((c, -d), x.dtype), x[:, :l + d]], axis=1)


def _instnorm_relu(y, eps=1e-5):
    """InstanceNorm2d (affine=False, biased var, eps=1e-5) + ReLU.

    y: (C, H*W) for a single image -> normalize each row over its lanes.
    """
    mu = jnp.mean(y, axis=1, keepdims=True)
    yc = y - mu
    var = jnp.mean(yc * yc, axis=1, keepdims=True)
    return jnp.maximum(yc * jax.lax.rsqrt(var + eps), 0.0)


def _convt_s2_planes(x, wstack, mask9, h, w):
    """ConvTranspose2d(K=4, s=2, p=1) -> 4 parity planes, one MXU GEMM.

    x      : (Cin, h*w)          input image, flattened spatial on lanes
    wstack : (4*Cout, 9*Cin)     prepacked sub-pixel weights
    mask9  : (9, h*w)            validity masks for the 9 (dh, dw) shifts
    returns: (4*Cout, h*w)       row block p = 2a+b holds output parity (a, b)
    """
    parts = []
    for k, (dh, dw) in enumerate(SHIFTS):
        shifted = _shift_cols(x, dh * w + dw) * mask9[k:k + 1, :]
        parts.append(shifted)
    xcat = jnp.concatenate(parts, axis=0)                       # (9*Cin, h*w)
    return jnp.dot(wstack, xcat, preferred_element_type=jnp.float32)


def _interleave(p, g):
    """Reassemble parity planes into the full-resolution image.

    p: (4*C, L_in) parity-stacked planes; g: (4*L_in, 4*L_in) constant 0/1
    scatter matrices (one (L_in, L_out) block per parity).  Exact (each output
    element is copied from exactly one input element).
    """
    c4, l_in = p.shape
    c = c4 // 4
    l_out = g.shape[1]
    y = jnp.zeros((c, l_out), jnp.float32)
    for q in range(4):
        y = y + jnp.dot(p[q * c:(q + 1) * c, :],
                        g[q * l_in:(q + 1) * l_in, :],
                        preferred_element_type=jnp.float32)
    return y


# -------------------------------- the kernel --------------------------------

def _generator_kernel(x_ref, w1_ref,
                      w2_ref, m2_ref, g2_ref,
                      w3_ref, m3_ref, g3_ref,
                      w4_ref, m4_ref,
                      o_ref):
    # ---- layer 1: ConvT(nz -> 4*ngf, K=4, s=1, p=0) on a 1x1 input ---------
    # out[c, kh*4+kw] = sum_cin W1[cin, c, kh, kw] * x[cin]
    x = x_ref[...]                                   # (NZ, 1)
    w1 = w1_ref[...]                                 # (NZ * 32, 16)
    c1 = NGF * 4
    y = jnp.zeros((c1, 16), jnp.float32)
    for cin in range(NZ):
        y = y + w1[cin * c1:(cin + 1) * c1, :] * x[cin:cin + 1, :]
    y = _instnorm_relu(y)                            # (32, 16)  = 4x4 spatial

    # ---- layer 2: ConvT(32 -> 16, K=4, s=2, p=1): 4x4 -> 8x8 ---------------
    p = _convt_s2_planes(y, w2_ref[...], m2_ref[...], 4, 4)     # (64, 16)
    y = _interleave(p, g2_ref[...])                             # (16, 64)
    y = _instnorm_relu(y)

    # ---- layer 3: ConvT(16 -> 8, K=4, s=2, p=1): 8x8 -> 16x16 --------------
    p = _convt_s2_planes(y, w3_ref[...], m3_ref[...], 8, 8)     # (32, 64)
    y = _interleave(p, g3_ref[...])                             # (8, 256)
    y = _instnorm_relu(y)

    # ---- layer 4: ConvT(8 -> 3, K=4, s=2, p=1): 16x16 -> 32x32 + Tanh ------
    # output kept in lane-dense parity-plane form (12, 256); interleaved to
    # NCHW by the wrapper (cheap layout glue on 24 KB).
    p = _convt_s2_planes(y, w4_ref[...], m4_ref[...], 16, 16)   # (12, 256)
    o_ref[...] = jnp.tanh(p)


# --------------------- one-time parameter / constant prep -------------------

def init_generator_params(key):
    """Raw weights in the PyTorch ConvTranspose2d layout (Cin, Cout, K, K)."""
    ks = jax.random.split(key, 4)

    def w(k, cin, cout):
        return jax.random.normal(k, (cin, cout, K, K), jnp.float32) * 0.02

    return {"w1": w(ks[0], NZ, NGF * 4), "w2": w(ks[1], NGF * 4, NGF * 2),
            "w3": w(ks[2], NGF * 2, NGF), "w4": w(ks[3], NGF, NC)}


def _wstack_s2(w):
    """Pack (Cin, Cout, 4, 4) into the sub-pixel GEMM matrix (4*Cout, 9*Cin)."""
    w = np.asarray(w)
    cin, cout = w.shape[0], w.shape[1]
    ws = np.zeros((4 * cout, 9 * cin), np.float32)
    for a in (0, 1):
        for b in (0, 1):
            par = 2 * a + b
            for dh, kh in TAPS[a]:
                for dw, kw in TAPS[b]:
                    s = SHIFTS.index((dh, dw))
                    ws[par * cout:(par + 1) * cout,
                       s * cin:(s + 1) * cin] = w[:, :, kh, kw].T
    return jnp.asarray(ws)


def _masks(h, w):
    """(9, h*w) validity masks for the 9 spatial shifts."""
    hh = np.repeat(np.arange(h), w)
    ww = np.tile(np.arange(w), h)
    m = np.zeros((9, h * w), np.float32)
    for k, (dh, dw) in enumerate(SHIFTS):
        m[k] = ((hh + dh >= 0) & (hh + dh < h) &
                (ww + dw >= 0) & (ww + dw < w))
    return jnp.asarray(m)


def _gstack(h, w):
    """(4*h*w, 4*h*w) 0/1 scatter matrices interleaving the 4 parity planes."""
    l_in = h * w
    g = np.zeros((4 * l_in, 4 * l_in), np.float32)
    for a in (0, 1):
        for b in (0, 1):
            par = 2 * a + b
            for i in range(h):
                for j in range(w):
                    g[par * l_in + i * w + j,
                      (2 * i + a) * (2 * w) + (2 * j + b)] = 1.0
    return jnp.asarray(g)


def prepare_params(raw):
    """Hoisted weight repacking + constant interleave/mask matrices."""
    return {
        "w1": jnp.asarray(np.asarray(raw["w1"]).reshape(NZ * NGF * 4, K * K)),
        "w2": _wstack_s2(raw["w2"]), "m2": _masks(4, 4), "g2": _gstack(4, 4),
        "w3": _wstack_s2(raw["w3"]), "m3": _masks(8, 8), "g3": _gstack(8, 8),
        "w4": _wstack_s2(raw["w4"]), "m4": _masks(16, 16),
    }


# ------------------------------ public forward ------------------------------

@jax.jit
def generator_forward(prep, x_nchw):
    n = x_nchw.shape[0]
    x = x_nchw.reshape(n, NZ, 1).astype(jnp.float32)
    zero2 = lambda i: (0, 0)

    planes = pl.pallas_call(
        _generator_kernel,
        out_shape=jax.ShapeDtypeStruct((n, 4 * NC, 256), jnp.float32),
        grid=(n,),
        in_specs=[
            pl.BlockSpec((None, NZ, 1), lambda i: (i, 0, 0)),   # latent
            pl.BlockSpec(prep["w1"].shape, zero2),
            pl.BlockSpec(prep["w2"].shape, zero2),
            pl.BlockSpec(prep["m2"].shape, zero2),
            pl.BlockSpec(prep["g2"].shape, zero2),
            pl.BlockSpec(prep["w3"].shape, zero2),
            pl.BlockSpec(prep["m3"].shape, zero2),
            pl.BlockSpec(prep["g3"].shape, zero2),
            pl.BlockSpec(prep["w4"].shape, zero2),
            pl.BlockSpec(prep["m4"].shape, zero2),
        ],
        out_specs=pl.BlockSpec((None, 4 * NC, 256), lambda i: (i, 0, 0)),
        compiler_params=pltpu.CompilerParams(
            dimension_semantics=("parallel",)),   # v7x: 2 TCs over the batch
        cost_estimate=pl.CostEstimate(
            flops=6_000_000, transcendentals=7_000, bytes_accessed=450_000),
    )(x, prep["w1"], prep["w2"], prep["m2"], prep["g2"],
      prep["w3"], prep["m3"], prep["g3"], prep["w4"], prep["m4"])

    # parity planes -> NCHW (layout glue only: 24 KB reshape/transpose)
    t = planes.reshape(n, 2, 2, NC, 16, 16)          # (n, a, b, c, u, v)
    return t.transpose(0, 3, 4, 1, 5, 2).reshape(n, NC, 32, 32)


# ------------------- pure-JAX reference (PyTorch semantics) -----------------

def _ref_convt(x, w, s, p):
    """ConvTranspose2d(bias=False): zero-insert + pad(K-1-p) + flipped conv."""
    n, cin, h, wd = x.shape
    _, cout, k, _ = w.shape
    hu, wu = (h - 1) * s + 1, (wd - 1) * s + 1
    xu = jnp.zeros((n, cin, hu, wu), x.dtype).at[:, :, ::s, ::s].set(x)
    pad = k - 1 - p
    xp = jnp.pad(xu, ((0, 0), (0, 0), (pad, pad), (pad, pad)))
    ho, wo = (h - 1) * s - 2 * p + k, (wd - 1) * s - 2 * p + k
    wf = w[:, :, ::-1, ::-1]
    out = jnp.zeros((n, cout, ho, wo), jnp.float32)
    for kh in range(k):
        for kw in range(k):
            out = out + jnp.einsum(
                "nihw,io->nohw",
                xp[:, :, kh:kh + ho, kw:kw + wo], wf[:, :, kh, kw],
                precision=jax.lax.Precision.HIGHEST)
    return out


def _ref_in_relu(x, eps=1e-5):
    mu = jnp.mean(x, axis=(2, 3), keepdims=True)
    var = jnp.mean(jnp.square(x - mu), axis=(2, 3), keepdims=True)
    return jnp.maximum((x - mu) * jax.lax.rsqrt(var + eps), 0.0)


def reference_forward(raw, x):
    y = _ref_in_relu(_ref_convt(x, raw["w1"], 1, 0))
    y = _ref_in_relu(_ref_convt(y, raw["w2"], 2, 1))
    y = _ref_in_relu(_ref_convt(y, raw["w3"], 2, 1))
    return jnp.tanh(_ref_convt(y, raw["w4"], 2, 1))


# ------------------------------------ main ----------------------------------

if __name__ == "__main__":
    n = 2
    key = jax.random.PRNGKey(0)
    kp, kx = jax.random.split(key)

    raw = init_generator_params(kp)
    prep = prepare_params(raw)                       # one-time weight repack
    x = jax.random.normal(kx, (n, NZ, 1, 1), jnp.float32)   # latent input

    y = generator_forward(prep, x)
    y = jax.block_until_ready(y)
    assert y.shape == (n, NC, 32, 32), y.shape
    assert bool(jnp.all(jnp.isfinite(y)))

    # numerical check against a pure-JAX reference of the PyTorch module
    y_ref = reference_forward(raw, x)
    err = float(jnp.max(jnp.abs(y - y_ref)))
    assert err < 5e-3, f"max abs err vs reference: {err}"

    print("KERNEL_OK")
</pallas_src>

<mosaic_0001>
module attributes {stable_mosaic.version = 11 : i64} {
  func.func @_generator_kernel(%arg0: i32, %arg1: memref<1x8x1xf32, #tpu.memory_space<vmem>>, %arg2: memref<256x16xf32, #tpu.memory_space<vmem>>, %arg3: memref<64x288xf32, #tpu.memory_space<vmem>>, %arg4: memref<9x16xf32, #tpu.memory_space<vmem>>, %arg5: memref<64x64xf32, #tpu.memory_space<vmem>>, %arg6: memref<32x144xf32, #tpu.memory_space<vmem>>, %arg7: memref<9x64xf32, #tpu.memory_space<vmem>>, %arg8: memref<256x256xf32, #tpu.memory_space<vmem>>, %arg9: memref<12x72xf32, #tpu.memory_space<vmem>>, %arg10: memref<9x256xf32, #tpu.memory_space<vmem>>, %arg11: memref<1x12x256xf32, #tpu.memory_space<vmem>>) attributes {dimension_semantics = [#tpu.dimension_semantics<parallel>], iteration_bounds = array<i64: 2>, scalar_prefetch = 0 : i64, scratch_operands = 0 : i64, tpu.core_type = #tpu.core_type<tc>, window_params = [{transform_indices = @transform_0, window_bounds = array<i64: 1, 8, 1>}, {pipeline_mode = #tpu.pipeline_mode<synchronous>, transform_indices = @transform_1, window_bounds = array<i64: 256, 16>}, {pipeline_mode = #tpu.pipeline_mode<synchronous>, transform_indices = @transform_2, window_bounds = array<i64: 64, 288>}, {pipeline_mode = #tpu.pipeline_mode<synchronous>, transform_indices = @transform_3, window_bounds = array<i64: 9, 16>}, {pipeline_mode = #tpu.pipeline_mode<synchronous>, transform_indices = @transform_4, window_bounds = array<i64: 64, 64>}, {pipeline_mode = #tpu.pipeline_mode<synchronous>, transform_indices = @transform_5, window_bounds = array<i64: 32, 144>}, {pipeline_mode = #tpu.pipeline_mode<synchronous>, transform_indices = @transform_6, window_bounds = array<i64: 9, 64>}, {pipeline_mode = #tpu.pipeline_mode<synchronous>, transform_indices = @transform_7, window_bounds = array<i64: 256, 256>}, {pipeline_mode = #tpu.pipeline_mode<synchronous>, transform_indices = @transform_8, window_bounds = array<i64: 12, 72>}, {pipeline_mode = #tpu.pipeline_mode<synchronous>, transform_indices = @transform_9, window_bounds = array<i64: 9, 256>}, {transform_indices = @transform_10, window_bounds = array<i64: 1, 12, 256>}]} {
    %c0 = arith.constant 0 : index
    %c0_0 = arith.constant 0 : index
    %c0_1 = arith.constant 0 : index
    %0 = vector.load %arg1[%c0, %c0_0, %c0_1] : memref<1x8x1xf32, #tpu.memory_space<vmem>>, vector<1x8x1xf32>
    %1 = vector.shape_cast %0 : vector<1x8x1xf32> to vector<8x1xf32>
    %c0_2 = arith.constant 0 : index
    %c0_3 = arith.constant 0 : index
    %2 = vector.load %arg2[%c0_2, %c0_3] : memref<256x16xf32, #tpu.memory_space<vmem>>, vector<256x16xf32>
    %cst = arith.constant 0.000000e+00 : f32
    %3 = vector.broadcast %cst : f32 to vector<32x16xf32>
    %4 = vector.extract_strided_slice %2 {offsets = [0, 0], sizes = [32, 16], strides = [1, 1]} : vector<256x16xf32> to vector<32x16xf32>
    %5 = vector.extract_strided_slice %1 {offsets = [0, 0], sizes = [1, 1], strides = [1, 1]} : vector<8x1xf32> to vector<1x1xf32>
    %6 = vector.broadcast %5 : vector<1x1xf32> to vector<32x16xf32>
    %7 = arith.mulf %4, %6 : vector<32x16xf32>
    %8 = arith.addf %3, %7 : vector<32x16xf32>
    %9 = vector.extract_strided_slice %2 {offsets = [32, 0], sizes = [32, 16], strides = [1, 1]} : vector<256x16xf32> to vector<32x16xf32>
    %10 = vector.extract_strided_slice %1 {offsets = [1, 0], sizes = [1, 1], strides = [1, 1]} : vector<8x1xf32> to vector<1x1xf32>
    %11 = vector.broadcast %10 : vector<1x1xf32> to vector<32x16xf32>
    %12 = arith.mulf %9, %11 : vector<32x16xf32>
    %13 = arith.addf %8, %12 : vector<32x16xf32>
    %14 = vector.extract_strided_slice %2 {offsets = [64, 0], sizes = [32, 16], strides = [1, 1]} : vector<256x16xf32> to vector<32x16xf32>
    %15 = vector.extract_strided_slice %1 {offsets = [2, 0], sizes = [1, 1], strides = [1, 1]} : vector<8x1xf32> to vector<1x1xf32>
    %16 = vector.broadcast %15 : vector<1x1xf32> to vector<32x16xf32>
    %17 = arith.mulf %14, %16 : vector<32x16xf32>
    %18 = arith.addf %13, %17 : vector<32x16xf32>
    %19 = vector.extract_strided_slice %2 {offsets = [96, 0], sizes = [32, 16], strides = [1, 1]} : vector<256x16xf32> to vector<32x16xf32>
    %20 = vector.extract_strided_slice %1 {offsets = [3, 0], sizes = [1, 1], strides = [1, 1]} : vector<8x1xf32> to vector<1x1xf32>
    %21 = vector.broadcast %20 : vector<1x1xf32> to vector<32x16xf32>
    %22 = arith.mulf %19, %21 : vector<32x16xf32>
    %23 = arith.addf %18, %22 : vector<32x16xf32>
    %24 = vector.extract_strided_slice %2 {offsets = [128, 0], sizes = [32, 16], strides = [1, 1]} : vector<256x16xf32> to vector<32x16xf32>
    %25 = vector.extract_strided_slice %1 {offsets = [4, 0], sizes = [1, 1], strides = [1, 1]} : vector<8x1xf32> to vector<1x1xf32>
    %26 = vector.broadcast %25 : vector<1x1xf32> to vector<32x16xf32>
    %27 = arith.mulf %24, %26 : vector<32x16xf32>
    %28 = arith.addf %23, %27 : vector<32x16xf32>
    %29 = vector.extract_strided_slice %2 {offsets = [160, 0], sizes = [32, 16], strides = [1, 1]} : vector<256x16xf32> to vector<32x16xf32>
    %30 = vector.extract_strided_slice %1 {offsets = [5, 0], sizes = [1, 1], strides = [1, 1]} : vector<8x1xf32> to vector<1x1xf32>
    %31 = vector.broadcast %30 : vector<1x1xf32> to vector<32x16xf32>
    %32 = arith.mulf %29, %31 : vector<32x16xf32>
    %33 = arith.addf %28, %32 : vector<32x16xf32>
    %34 = vector.extract_strided_slice %2 {offsets = [192, 0], sizes = [32, 16], strides = [1, 1]} : vector<256x16xf32> to vector<32x16xf32>
    %35 = vector.extract_strided_slice %1 {offsets = [6, 0], sizes = [1, 1], strides = [1, 1]} : vector<8x1xf32> to vector<1x1xf32>
    %36 = vector.broadcast %35 : vector<1x1xf32> to vector<32x16xf32>
    %37 = arith.mulf %34, %36 : vector<32x16xf32>
    %38 = arith.addf %33, %37 : vector<32x16xf32>
    %39 = vector.extract_strided_slice %2 {offsets = [224, 0], sizes = [32, 16], strides = [1, 1]} : vector<256x16xf32> to vector<32x16xf32>
    %40 = vector.extract_strided_slice %1 {offsets = [7, 0], sizes = [1, 1], strides = [1, 1]} : vector<8x1xf32> to vector<1x1xf32>
    %41 = vector.broadcast %40 : vector<1x1xf32> to vector<32x16xf32>
    %42 = arith.mulf %39, %41 : vector<32x16xf32>
    %43 = arith.addf %38, %42 : vector<32x16xf32>
    %cst_4 = arith.constant dense<0.000000e+00> : vector<32xf32>
    %44 = vector.multi_reduction <add>, %43, %cst_4 [1] : vector<32x16xf32> to vector<32xf32>
    %45 = vector.shape_cast %44 : vector<32xf32> to vector<32x1xf32>
    %cst_5 = arith.constant 1.600000e+01 : f32
    %46 = vector.broadcast %cst_5 : f32 to vector<32x1xf32>
    %47 = arith.divf %45, %46 : vector<32x1xf32>
    %48 = vector.broadcast %47 : vector<32x1xf32> to vector<32x16xf32>
    %49 = arith.subf %43, %48 : vector<32x16xf32>
    %50 = arith.mulf %49, %49 : vector<32x16xf32>
    %cst_6 = arith.constant dense<0.000000e+00> : vector<32xf32>
    %51 = vector.multi_reduction <add>, %50, %cst_6 [1] : vector<32x16xf32> to vector<32xf32>
    %52 = vector.shape_cast %51 : vector<32xf32> to vector<32x1xf32>
    %cst_7 = arith.constant 1.600000e+01 : f32
    %53 = vector.broadcast %cst_7 : f32 to vector<32x1xf32>
    %54 = arith.divf %52, %53 : vector<32x1xf32>
    %cst_8 = arith.constant 9.99999974E-6 : f32
    %55 = vector.broadcast %cst_8 : f32 to vector<32x1xf32>
    %56 = arith.addf %54, %55 : vector<32x1xf32>
    %57 = math.rsqrt %56 : vector<32x1xf32>
    %58 = vector.broadcast %57 : vector<32x1xf32> to vector<32x16xf32>
    %59 = arith.mulf %49, %58 : vector<32x16xf32>
    %cst_9 = arith.constant 0.000000e+00 : f32
    %60 = vector.broadcast %cst_9 : f32 to vector<32x16xf32>
    %61 = arith.maximumf %59, %60 : vector<32x16xf32>
    %c0_10 = arith.constant 0 : index
    %c0_11 = arith.constant 0 : index
    %62 = vector.load %arg3[%c0_10, %c0_11] : memref<64x288xf32, #tpu.memory_space<vmem>>, vector<64x288xf32>
    %c0_12 = arith.constant 0 : index
    %c0_13 = arith.constant 0 : index
    %63 = vector.load %arg4[%c0_12, %c0_13] : memref<9x16xf32, #tpu.memory_space<vmem>>, vector<9x16xf32>
    %cst_14 = arith.constant 0.000000e+00 : f32
    %64 = vector.broadcast %cst_14 : f32 to vector<32x5xf32>
    %65 = vector.extract_strided_slice %61 {offsets = [0, 0], sizes = [32, 11], strides = [1, 1]} : vector<32x16xf32> to vector<32x11xf32>
    %66 = tpu.concatenate %64, %65 in 1 : vector<32x5xf32>, vector<32x11xf32> -> vector<32x16xf32>
    %67 = vector.extract_strided_slice %63 {offsets = [0, 0], sizes = [1, 16], strides = [1, 1]} : vector<9x16xf32> to vector<1x16xf32>
    %68 = vector.broadcast %67 : vector<1x16xf32> to vector<32x16xf32>
    %69 = arith.mulf %66, %68 : vector<32x16xf32>
    %cst_15 = arith.constant 0.000000e+00 : f32
    %70 = vector.broadcast %cst_15 : f32 to vector<32x4xf32>
    %71 = vector.extract_strided_slice %61 {offsets = [0, 0], sizes = [32, 12], strides = [1, 1]} : vector<32x16xf32> to vector<32x12xf32>
    %72 = tpu.concatenate %70, %71 in 1 : vector<32x4xf32>, vector<32x12xf32> -> vector<32x16xf32>
    %73 = vector.extract_strided_slice %63 {offsets = [1, 0], sizes = [1, 16], strides = [1, 1]} : vector<9x16xf32> to vector<1x16xf32>
    %74 = vector.broadcast %73 : vector<1x16xf32> to vector<32x16xf32>
    %75 = arith.mulf %72, %74 : vector<32x16xf32>
    %cst_16 = arith.constant 0.000000e+00 : f32
    %76 = vector.broadcast %cst_16 : f32 to vector<32x3xf32>
    %77 = vector.extract_strided_slice %61 {offsets = [0, 0], sizes = [32, 13], strides = [1, 1]} : vector<32x16xf32> to vector<32x13xf32>
    %78 = tpu.concatenate %76, %77 in 1 : vector<32x3xf32>, vector<32x13xf32> -> vector<32x16xf32>
    %79 = vector.extract_strided_slice %63 {offsets = [2, 0], sizes = [1, 16], strides = [1, 1]} : vector<9x16xf32> to vector<1x16xf32>
    %80 = vector.broadcast %79 : vector<1x16xf32> to vector<32x16xf32>
    %81 = arith.mulf %78, %80 : vector<32x16xf32>
    %cst_17 = arith.constant 0.000000e+00 : f32
    %82 = vector.broadcast %cst_17 : f32 to vector<32x1xf32>
    %83 = vector.extract_strided_slice %61 {offsets = [0, 0], sizes = [32, 15], strides = [1, 1]} : vector<32x16xf32> to vector<32x15xf32>
    %84 = tpu.concatenate %82, %83 in 1 : vector<32x1xf32>, vector<32x15xf32> -> vector<32x16xf32>
    %85 = vector.extract_strided_slice %63 {offsets = [3, 0], sizes = [1, 16], strides = [1, 1]} : vector<9x16xf32> to vector<1x16xf32>
    %86 = vector.broadcast %85 : vector<1x16xf32> to vector<32x16xf32>
    %87 = arith.mulf %84, %86 : vector<32x16xf32>
    %88 = vector.extract_strided_slice %63 {offsets = [4, 0], sizes = [1, 16], strides = [1, 1]} : vector<9x16xf32> to vector<1x16xf32>
    %89 = vector.broadcast %88 : vector<1x16xf32> to vector<32x16xf32>
    %90 = arith.mulf %61, %89 : vector<32x16xf32>
    %91 = vector.extract_strided_slice %61 {offsets = [0, 1], sizes = [32, 15], strides = [1, 1]} : vector<32x16xf32> to vector<32x15xf32>
    %cst_18 = arith.constant 0.000000e+00 : f32
    %92 = vector.broadcast %cst_18 : f32 to vector<32x1xf32>
    %93 = tpu.concatenate %91, %92 in 1 : vector<32x15xf32>, vector<32x1xf32> -> vector<32x16xf32>
    %94 = vector.extract_strided_slice %63 {offsets = [5, 0], sizes = [1, 16], strides = [1, 1]} : vector<9x16xf32> to vector<1x16xf32>
    %95 = vector.broadcast %94 : vector<1x16xf32> to vector<32x16xf32>
    %96 = arith.mulf %93, %95 : vector<32x16xf32>
    %97 = vector.extract_strided_slice %61 {offsets = [0, 3], sizes = [32, 13], strides = [1, 1]} : vector<32x16xf32> to vector<32x13xf32>
    %cst_19 = arith.constant 0.000000e+00 : f32
    %98 = vector.broadcast %cst_19 : f32 to vector<32x3xf32>
    %99 = tpu.concatenate %97, %98 in 1 : vector<32x13xf32>, vector<32x3xf32> -> vector<32x16xf32>
    %100 = vector.extract_strided_slice %63 {offsets = [6, 0], sizes = [1, 16], strides = [1, 1]} : vector<9x16xf32> to vector<1x16xf32>
    %101 = vector.broadcast %100 : vector<1x16xf32> to vector<32x16xf32>
    %102 = arith.mulf %99, %101 : vector<32x16xf32>
    %103 = vector.extract_strided_slice %61 {offsets = [0, 4], sizes = [32, 12], strides = [1, 1]} : vector<32x16xf32> to vector<32x12xf32>
    %cst_20 = arith.constant 0.000000e+00 : f32
    %104 = vector.broadcast %cst_20 : f32 to vector<32x4xf32>
    %105 = tpu.concatenate %103, %104 in 1 : vector<32x12xf32>, vector<32x4xf32> -> vector<32x16xf32>
    %106 = vector.extract_strided_slice %63 {offsets = [7, 0], sizes = [1, 16], strides = [1, 1]} : vector<9x16xf32> to vector<1x16xf32>
    %107 = vector.broadcast %106 : vector<1x16xf32> to vector<32x16xf32>
    %108 = arith.mulf %105, %107 : vector<32x16xf32>
    %109 = vector.extract_strided_slice %61 {offsets = [0, 5], sizes = [32, 11], strides = [1, 1]} : vector<32x16xf32> to vector<32x11xf32>
    %cst_21 = arith.constant 0.000000e+00 : f32
    %110 = vector.broadcast %cst_21 : f32 to vector<32x5xf32>
    %111 = tpu.concatenate %109, %110 in 1 : vector<32x11xf32>, vector<32x5xf32> -> vector<32x16xf32>
    %112 = vector.extract_strided_slice %63 {offsets = [8, 0], sizes = [1, 16], strides = [1, 1]} : vector<9x16xf32> to vector<1x16xf32>
    %113 = vector.broadcast %112 : vector<1x16xf32> to vector<32x16xf32>
    %114 = arith.mulf %111, %113 : vector<32x16xf32>
    %115 = tpu.concatenate %69, %75, %81, %87, %90, %96, %102, %108, %114 in 0 : vector<32x16xf32>, vector<32x16xf32>, vector<32x16xf32>, vector<32x16xf32>, vector<32x16xf32>, vector<32x16xf32>, vector<32x16xf32>, vector<32x16xf32>, vector<32x16xf32> -> vector<288x16xf32>
    %cst_22 = arith.constant dense<0.000000e+00> : vector<64x16xf32>
    %116 = tpu.matmul %62, %115, %cst_22 {dimension_numbers = #tpu.dot_dimension_numbers<[1], [0], [0], [1], [0, 0, 1, 1], [], []>} : vector<64x288xf32>, vector<288x16xf32>, vector<64x16xf32> -> vector<64x16xf32>
    %c0_23 = arith.constant 0 : index
    %c0_24 = arith.constant 0 : index
    %117 = vector.load %arg5[%c0_23, %c0_24] : memref<64x64xf32, #tpu.memory_space<vmem>>, vector<64x64xf32>
    %cst_25 = arith.constant 0.000000e+00 : f32
    %118 = vector.broadcast %cst_25 : f32 to vector<16x64xf32>
    %119 = vector.extract_strided_slice %116 {offsets = [0, 0], sizes = [16, 16], strides = [1, 1]} : vector<64x16xf32> to vector<16x16xf32>
    %120 = vector.extract_strided_slice %117 {offsets = [0, 0], sizes = [16, 64], strides = [1, 1]} : vector<64x64xf32> to vector<16x64xf32>
    %cst_26 = arith.constant dense<0.000000e+00> : vector<16x64xf32>
    %121 = tpu.matmul %119, %120, %cst_26 {dimension_numbers = #tpu.dot_dimension_numbers<[1], [0], [0], [1], [0, 0, 1, 1], [], []>} : vector<16x16xf32>, vector<16x64xf32>, vector<16x64xf32> -> vector<16x64xf32>
    %122 = arith.addf %118, %121 : vector<16x64xf32>
    %123 = vector.extract_strided_slice %116 {offsets = [16, 0], sizes = [16, 16], strides = [1, 1]} : vector<64x16xf32> to vector<16x16xf32>
    %124 = vector.extract_strided_slice %117 {offsets = [16, 0], sizes = [16, 64], strides = [1, 1]} : vector<64x64xf32> to vector<16x64xf32>
    %cst_27 = arith.constant dense<0.000000e+00> : vector<16x64xf32>
    %125 = tpu.matmul %123, %124, %cst_27 {dimension_numbers = #tpu.dot_dimension_numbers<[1], [0], [0], [1], [0, 0, 1, 1], [], []>} : vector<16x16xf32>, vector<16x64xf32>, vector<16x64xf32> -> vector<16x64xf32>
    %126 = arith.addf %122, %125 : vector<16x64xf32>
    %127 = vector.extract_strided_slice %116 {offsets = [32, 0], sizes = [16, 16], strides = [1, 1]} : vector<64x16xf32> to vector<16x16xf32>
    %128 = vector.extract_strided_slice %117 {offsets = [32, 0], sizes = [16, 64], strides = [1, 1]} : vector<64x64xf32> to vector<16x64xf32>
    %cst_28 = arith.constant dense<0.000000e+00> : vector<16x64xf32>
    %129 = tpu.matmul %127, %128, %cst_28 {dimension_numbers = #tpu.dot_dimension_numbers<[1], [0], [0], [1], [0, 0, 1, 1], [], []>} : vector<16x16xf32>, vector<16x64xf32>, vector<16x64xf32> -> vector<16x64xf32>
    %130 = arith.addf %126, %129 : vector<16x64xf32>
    %131 = vector.extract_strided_slice %116 {offsets = [48, 0], sizes = [16, 16], strides = [1, 1]} : vector<64x16xf32> to vector<16x16xf32>
    %132 = vector.extract_strided_slice %117 {offsets = [48, 0], sizes = [16, 64], strides = [1, 1]} : vector<64x64xf32> to vector<16x64xf32>
    %cst_29 = arith.constant dense<0.000000e+00> : vector<16x64xf32>
    %133 = tpu.matmul %131, %132, %cst_29 {dimension_numbers = #tpu.dot_dimension_numbers<[1], [0], [0], [1], [0, 0, 1, 1], [], []>} : vector<16x16xf32>, vector<16x64xf32>, vector<16x64xf32> -> vector<16x64xf32>
    %134 = arith.addf %130, %133 : vector<16x64xf32>
    %cst_30 = arith.constant dense<0.000000e+00> : vector<16xf32>
    %135 = vector.multi_reduction <add>, %134, %cst_30 [1] : vector<16x64xf32> to vector<16xf32>
    %136 = vector.shape_cast %135 : vector<16xf32> to vector<16x1xf32>
    %cst_31 = arith.constant 6.400000e+01 : f32
    %137 = vector.broadcast %cst_31 : f32 to vector<16x1xf32>
    %138 = arith.divf %136, %137 : vector<16x1xf32>
    %139 = vector.broadcast %138 : vector<16x1xf32> to vector<16x64xf32>
    %140 = arith.subf %134, %139 : vector<16x64xf32>
    %141 = arith.mulf %140, %140 : vector<16x64xf32>
    %cst_32 = arith.constant dense<0.000000e+00> : vector<16xf32>
    %142 = vector.multi_reduction <add>, %141, %cst_32 [1] : vector<16x64xf32> to vector<16xf32>
    %143 = vector.shape_cast %142 : vector<16xf32> to vector<16x1xf32>
    %cst_33 = arith.constant 6.400000e+01 : f32
    %144 = vector.broadcast %cst_33 : f32 to vector<16x1xf32>
    %145 = arith.divf %143, %144 : vector<16x1xf32>
    %cst_34 = arith.constant 9.99999974E-6 : f32
    %146 = vector.broadcast %cst_34 : f32 to vector<16x1xf32>
    %147 = arith.addf %145, %146 : vector<16x1xf32>
    %148 = math.rsqrt %147 : vector<16x1xf32>
    %149 = vector.broadcast %148 : vector<16x1xf32> to vector<16x64xf32>
    %150 = arith.mulf %140, %149 : vector<16x64xf32>
    %cst_35 = arith.constant 0.000000e+00 : f32
    %151 = vector.broadcast %cst_35 : f32 to vector<16x64xf32>
    %152 = arith.maximumf %150, %151 : vector<16x64xf32>
    %c0_36 = arith.constant 0 : index
    %c0_37 = arith.constant 0 : index
    %153 = vector.load %arg6[%c0_36, %c0_37] : memref<32x144xf32, #tpu.memory_space<vmem>>, vector<32x144xf32>
    %c0_38 = arith.constant 0 : index
    %c0_39 = arith.constant 0 : index
    %154 = vector.load %arg7[%c0_38, %c0_39] : memref<9x64xf32, #tpu.memory_space<vmem>>, vector<9x64xf32>
    %cst_40 = arith.constant 0.000000e+00 : f32
    %155 = vector.broadcast %cst_40 : f32 to vector<16x9xf32>
    %156 = vector.extract_strided_slice %152 {offsets = [0, 0], sizes = [16, 55], strides = [1, 1]} : vector<16x64xf32> to vector<16x55xf32>
    %157 = tpu.concatenate %155, %156 in 1 : vector<16x9xf32>, vector<16x55xf32> -> vector<16x64xf32>
    %158 = vector.extract_strided_slice %154 {offsets = [0, 0], sizes = [1, 64], strides = [1, 1]} : vector<9x64xf32> to vector<1x64xf32>
    %159 = vector.broadcast %158 : vector<1x64xf32> to vector<16x64xf32>
    %160 = arith.mulf %157, %159 : vector<16x64xf32>
    %cst_41 = arith.constant 0.000000e+00 : f32
    %161 = vector.broadcast %cst_41 : f32 to vector<16x8xf32>
    %162 = vector.extract_strided_slice %152 {offsets = [0, 0], sizes = [16, 56], strides = [1, 1]} : vector<16x64xf32> to vector<16x56xf32>
    %163 = tpu.concatenate %161, %162 in 1 : vector<16x8xf32>, vector<16x56xf32> -> vector<16x64xf32>
    %164 = vector.extract_strided_slice %154 {offsets = [1, 0], sizes = [1, 64], strides = [1, 1]} : vector<9x64xf32> to vector<1x64xf32>
    %165 = vector.broadcast %164 : vector<1x64xf32> to vector<16x64xf32>
    %166 = arith.mulf %163, %165 : vector<16x64xf32>
    %cst_42 = arith.constant 0.000000e+00 : f32
    %167 = vector.broadcast %cst_42 : f32 to vector<16x7xf32>
    %168 = vector.extract_strided_slice %152 {offsets = [0, 0], sizes = [16, 57], strides = [1, 1]} : vector<16x64xf32> to vector<16x57xf32>
    %169 = tpu.concatenate %167, %168 in 1 : vector<16x7xf32>, vector<16x57xf32> -> vector<16x64xf32>
    %170 = vector.extract_strided_slice %154 {offsets = [2, 0], sizes = [1, 64], strides = [1, 1]} : vector<9x64xf32> to vector<1x64xf32>
    %171 = vector.broadcast %170 : vector<1x64xf32> to vector<16x64xf32>
    %172 = arith.mulf %169, %171 : vector<16x64xf32>
    %cst_43 = arith.constant 0.000000e+00 : f32
    %173 = vector.broadcast %cst_43 : f32 to vector<16x1xf32>
    %174 = vector.extract_strided_slice %152 {offsets = [0, 0], sizes = [16, 63], strides = [1, 1]} : vector<16x64xf32> to vector<16x63xf32>
    %175 = tpu.concatenate %173, %174 in 1 : vector<16x1xf32>, vector<16x63xf32> -> vector<16x64xf32>
    %176 = vector.extract_strided_slice %154 {offsets = [3, 0], sizes = [1, 64], strides = [1, 1]} : vector<9x64xf32> to vector<1x64xf32>
    %177 = vector.broadcast %176 : vector<1x64xf32> to vector<16x64xf32>
    %178 = arith.mulf %175, %177 : vector<16x64xf32>
    %179 = vector.extract_strided_slice %154 {offsets = [4, 0], sizes = [1, 64], strides = [1, 1]} : vector<9x64xf32> to vector<1x64xf32>
    %180 = vector.broadcast %179 : vector<1x64xf32> to vector<16x64xf32>
    %181 = arith.mulf %152, %180 : vector<16x64xf32>
    %182 = vector.extract_strided_slice %152 {offsets = [0, 1], sizes = [16, 63], strides = [1, 1]} : vector<16x64xf32> to vector<16x63xf32>
    %cst_44 = arith.constant 0.000000e+00 : f32
    %183 = vector.broadcast %cst_44 : f32 to vector<16x1xf32>
    %184 = tpu.concatenate %182, %183 in 1 : vector<16x63xf32>, vector<16x1xf32> -> vector<16x64xf32>
    %185 = vector.extract_strided_slice %154 {offsets = [5, 0], sizes = [1, 64], strides = [1, 1]} : vector<9x64xf32> to vector<1x64xf32>
    %186 = vector.broadcast %185 : vector<1x64xf32> to vector<16x64xf32>
    %187 = arith.mulf %184, %186 : vector<16x64xf32>
    %188 = vector.extract_strided_slice %152 {offsets = [0, 7], sizes = [16, 57], strides = [1, 1]} : vector<16x64xf32> to vector<16x57xf32>
    %cst_45 = arith.constant 0.000000e+00 : f32
    %189 = vector.broadcast %cst_45 : f32 to vector<16x7xf32>
    %190 = tpu.concatenate %188, %189 in 1 : vector<16x57xf32>, vector<16x7xf32> -> vector<16x64xf32>
    %191 = vector.extract_strided_slice %154 {offsets = [6, 0], sizes = [1, 64], strides = [1, 1]} : vector<9x64xf32> to vector<1x64xf32>
    %192 = vector.broadcast %191 : vector<1x64xf32> to vector<16x64xf32>
    %193 = arith.mulf %190, %192 : vector<16x64xf32>
    %194 = vector.extract_strided_slice %152 {offsets = [0, 8], sizes = [16, 56], strides = [1, 1]} : vector<16x64xf32> to vector<16x56xf32>
    %cst_46 = arith.constant 0.000000e+00 : f32
    %195 = vector.broadcast %cst_46 : f32 to vector<16x8xf32>
    %196 = tpu.concatenate %194, %195 in 1 : vector<16x56xf32>, vector<16x8xf32> -> vector<16x64xf32>
    %197 = vector.extract_strided_slice %154 {offsets = [7, 0], sizes = [1, 64], strides = [1, 1]} : vector<9x64xf32> to vector<1x64xf32>
    %198 = vector.broadcast %197 : vector<1x64xf32> to vector<16x64xf32>
    %199 = arith.mulf %196, %198 : vector<16x64xf32>
    %200 = vector.extract_strided_slice %152 {offsets = [0, 9], sizes = [16, 55], strides = [1, 1]} : vector<16x64xf32> to vector<16x55xf32>
    %cst_47 = arith.constant 0.000000e+00 : f32
    %201 = vector.broadcast %cst_47 : f32 to vector<16x9xf32>
    %202 = tpu.concatenate %200, %201 in 1 : vector<16x55xf32>, vector<16x9xf32> -> vector<16x64xf32>
    %203 = vector.extract_strided_slice %154 {offsets = [8, 0], sizes = [1, 64], strides = [1, 1]} : vector<9x64xf32> to vector<1x64xf32>
    %204 = vector.broadcast %203 : vector<1x64xf32> to vector<16x64xf32>
    %205 = arith.mulf %202, %204 : vector<16x64xf32>
    %206 = tpu.concatenate %160, %166, %172, %178, %181, %187, %193, %199, %205 in 0 : vector<16x64xf32>, vector<16x64xf32>, vector<16x64xf32>, vector<16x64xf32>, vector<16x64xf32>, vector<16x64xf32>, vector<16x64xf32>, vector<16x64xf32>, vector<16x64xf32> -> vector<144x64xf32>
    %cst_48 = arith.constant dense<0.000000e+00> : vector<32x64xf32>
    %207 = tpu.matmul %153, %206, %cst_48 {dimension_numbers = #tpu.dot_dimension_numbers<[1], [0], [0], [1], [0, 0, 1, 1], [], []>} : vector<32x144xf32>, vector<144x64xf32>, vector<32x64xf32> -> vector<32x64xf32>
    %c0_49 = arith.constant 0 : index
    %c0_50 = arith.constant 0 : index
    %208 = vector.load %arg8[%c0_49, %c0_50] : memref<256x256xf32, #tpu.memory_space<vmem>>, vector<256x256xf32>
    %cst_51 = arith.constant 0.000000e+00 : f32
    %209 = vector.broadcast %cst_51 : f32 to vector<8x256xf32>
    %210 = vector.extract_strided_slice %207 {offsets = [0, 0], sizes = [8, 64], strides = [1, 1]} : vector<32x64xf32> to vector<8x64xf32>
    %211 = vector.extract_strided_slice %208 {offsets = [0, 0], sizes = [64, 256], strides = [1, 1]} : vector<256x256xf32> to vector<64x256xf32>
    %cst_52 = arith.constant dense<0.000000e+00> : vector<8x256xf32>
    %212 = tpu.matmul %210, %211, %cst_52 {dimension_numbers = #tpu.dot_dimension_numbers<[1], [0], [0], [1], [0, 0, 1, 1], [], []>} : vector<8x64xf32>, vector<64x256xf32>, vector<8x256xf32> -> vector<8x256xf32>
    %213 = arith.addf %209, %212 : vector<8x256xf32>
    %214 = vector.extract_strided_slice %207 {offsets = [8, 0], sizes = [8, 64], strides = [1, 1]} : vector<32x64xf32> to vector<8x64xf32>
    %215 = vector.extract_strided_slice %208 {offsets = [64, 0], sizes = [64, 256], strides = [1, 1]} : vector<256x256xf32> to vector<64x256xf32>
    %cst_53 = arith.constant dense<0.000000e+00> : vector<8x256xf32>
    %216 = tpu.matmul %214, %215, %cst_53 {dimension_numbers = #tpu.dot_dimension_numbers<[1], [0], [0], [1], [0, 0, 1, 1], [], []>} : vector<8x64xf32>, vector<64x256xf32>, vector<8x256xf32> -> vector<8x256xf32>
    %217 = arith.addf %213, %216 : vector<8x256xf32>
    %218 = vector.extract_strided_slice %207 {offsets = [16, 0], sizes = [8, 64], strides = [1, 1]} : vector<32x64xf32> to vector<8x64xf32>
    %219 = vector.extract_strided_slice %208 {offsets = [128, 0], sizes = [64, 256], strides = [1, 1]} : vector<256x256xf32> to vector<64x256xf32>
    %cst_54 = arith.constant dense<0.000000e+00> : vector<8x256xf32>
    %220 = tpu.matmul %218, %219, %cst_54 {dimension_numbers = #tpu.dot_dimension_numbers<[1], [0], [0], [1], [0, 0, 1, 1], [], []>} : vector<8x64xf32>, vector<64x256xf32>, vector<8x256xf32> -> vector<8x256xf32>
    %221 = arith.addf %217, %220 : vector<8x256xf32>
    %222 = vector.extract_strided_slice %207 {offsets = [24, 0], sizes = [8, 64], strides = [1, 1]} : vector<32x64xf32> to vector<8x64xf32>
    %223 = vector.extract_strided_slice %208 {offsets = [192, 0], sizes = [64, 256], strides = [1, 1]} : vector<256x256xf32> to vector<64x256xf32>
    %cst_55 = arith.constant dense<0.000000e+00> : vector<8x256xf32>
    %224 = tpu.matmul %222, %223, %cst_55 {dimension_numbers = #tpu.dot_dimension_numbers<[1], [0], [0], [1], [0, 0, 1, 1], [], []>} : vector<8x64xf32>, vector<64x256xf32>, vector<8x256xf32> -> vector<8x256xf32>
    %225 = arith.addf %221, %224 : vector<8x256xf32>
    %cst_56 = arith.constant dense<0.000000e+00> : vector<8xf32>
    %226 = vector.multi_reduction <add>, %225, %cst_56 [1] : vector<8x256xf32> to vector<8xf32>
    %227 = vector.shape_cast %226 : vector<8xf32> to vector<8x1xf32>
    %cst_57 = arith.constant 2.560000e+02 : f32
    %228 = vector.broadcast %cst_57 : f32 to vector<8x1xf32>
    %229 = arith.divf %227, %228 : vector<8x1xf32>
    %230 = vector.broadcast %229 : vector<8x1xf32> to vector<8x256xf32>
    %231 = arith.subf %225, %230 : vector<8x256xf32>
    %232 = arith.mulf %231, %231 : vector<8x256xf32>
    %cst_58 = arith.constant dense<0.000000e+00> : vector<8xf32>
    %233 = vector.multi_reduction <add>, %232, %cst_58 [1] : vector<8x256xf32> to vector<8xf32>
    %234 = vector.shape_cast %233 : vector<8xf32> to vector<8x1xf32>
    %cst_59 = arith.constant 2.560000e+02 : f32
    %235 = vector.broadcast %cst_59 : f32 to vector<8x1xf32>
    %236 = arith.divf %234, %235 : vector<8x1xf32>
    %cst_60 = arith.constant 9.99999974E-6 : f32
    %237 = vector.broadcast %cst_60 : f32 to vector<8x1xf32>
    %238 = arith.addf %236, %237 : vector<8x1xf32>
    %239 = math.rsqrt %238 : vector<8x1xf32>
    %240 = vector.broadcast %239 : vector<8x1xf32> to vector<8x256xf32>
    %241 = arith.mulf %231, %240 : vector<8x256xf32>
    %cst_61 = arith.constant 0.000000e+00 : f32
    %242 = vector.broadcast %cst_61 : f32 to vector<8x256xf32>
    %243 = arith.maximumf %241, %242 : vector<8x256xf32>
    %c0_62 = arith.constant 0 : index
    %c0_63 = arith.constant 0 : index
    %244 = vector.load %arg9[%c0_62, %c0_63] : memref<12x72xf32, #tpu.memory_space<vmem>>, vector<12x72xf32>
    %c0_64 = arith.constant 0 : index
    %c0_65 = arith.constant 0 : index
    %245 = vector.load %arg10[%c0_64, %c0_65] : memref<9x256xf32, #tpu.memory_space<vmem>>, vector<9x256xf32>
    %cst_66 = arith.constant 0.000000e+00 : f32
    %246 = vector.broadcast %cst_66 : f32 to vector<8x17xf32>
    %247 = vector.extract_strided_slice %243 {offsets = [0, 0], sizes = [8, 239], strides = [1, 1]} : vector<8x256xf32> to vector<8x239xf32>
    %248 = tpu.concatenate %246, %247 in 1 : vector<8x17xf32>, vector<8x239xf32> -> vector<8x256xf32>
    %249 = vector.extract_strided_slice %245 {offsets = [0, 0], sizes = [1, 256], strides = [1, 1]} : vector<9x256xf32> to vector<1x256xf32>
    %250 = vector.broadcast %249 : vector<1x256xf32> to vector<8x256xf32>
    %251 = arith.mulf %248, %250 : vector<8x256xf32>
    %cst_67 = arith.constant 0.000000e+00 : f32
    %252 = vector.broadcast %cst_67 : f32 to vector<8x16xf32>
    %253 = vector.extract_strided_slice %243 {offsets = [0, 0], sizes = [8, 240], strides = [1, 1]} : vector<8x256xf32> to vector<8x240xf32>
    %254 = tpu.concatenate %252, %253 in 1 : vector<8x16xf32>, vector<8x240xf32> -> vector<8x256xf32>
    %255 = vector.extract_strided_slice %245 {offsets = [1, 0], sizes = [1, 256], strides = [1, 1]} : vector<9x256xf32> to vector<1x256xf32>
    %256 = vector.broadcast %255 : vector<1x256xf32> to vector<8x256xf32>
    %257 = arith.mulf %254, %256 : vector<8x256xf32>
    %cst_68 = arith.constant 0.000000e+00 : f32
    %258 = vector.broadcast %cst_68 : f32 to vector<8x15xf32>
    %259 = vector.extract_strided_slice %243 {offsets = [0, 0], sizes = [8, 241], strides = [1, 1]} : vector<8x256xf32> to vector<8x241xf32>
    %260 = tpu.concatenate %258, %259 in 1 : vector<8x15xf32>, vector<8x241xf32> -> vector<8x256xf32>
    %261 = vector.extract_strided_slice %245 {offsets = [2, 0], sizes = [1, 256], strides = [1, 1]} : vector<9x256xf32> to vector<1x256xf32>
    %262 = vector.broadcast %261 : vector<1x256xf32> to vector<8x256xf32>
    %263 = arith.mulf %260, %262 : vector<8x256xf32>
    %cst_69 = arith.constant 0.000000e+00 : f32
    %264 = vector.broadcast %cst_69 : f32 to vector<8x1xf32>
    %265 = vector.extract_strided_slice %243 {offsets = [0, 0], sizes = [8, 255], strides = [1, 1]} : vector<8x256xf32> to vector<8x255xf32>
    %266 = tpu.concatenate %264, %265 in 1 : vector<8x1xf32>, vector<8x255xf32> -> vector<8x256xf32>
    %267 = vector.extract_strided_slice %245 {offsets = [3, 0], sizes = [1, 256], strides = [1, 1]} : vector<9x256xf32> to vector<1x256xf32>
    %268 = vector.broadcast %267 : vector<1x256xf32> to vector<8x256xf32>
    %269 = arith.mulf %266, %268 : vector<8x256xf32>
    %270 = vector.extract_strided_slice %245 {offsets = [4, 0], sizes = [1, 256], strides = [1, 1]} : vector<9x256xf32> to vector<1x256xf32>
    %271 = vector.broadcast %270 : vector<1x256xf32> to vector<8x256xf32>
    %272 = arith.mulf %243, %271 : vector<8x256xf32>
    %273 = vector.extract_strided_slice %243 {offsets = [0, 1], sizes = [8, 255], strides = [1, 1]} : vector<8x256xf32> to vector<8x255xf32>
    %cst_70 = arith.constant 0.000000e+00 : f32
    %274 = vector.broadcast %cst_70 : f32 to vector<8x1xf32>
    %275 = tpu.concatenate %273, %274 in 1 : vector<8x255xf32>, vector<8x1xf32> -> vector<8x256xf32>
    %276 = vector.extract_strided_slice %245 {offsets = [5, 0], sizes = [1, 256], strides = [1, 1]} : vector<9x256xf32> to vector<1x256xf32>
    %277 = vector.broadcast %276 : vector<1x256xf32> to vector<8x256xf32>
    %278 = arith.mulf %275, %277 : vector<8x256xf32>
    %279 = vector.extract_strided_slice %243 {offsets = [0, 15], sizes = [8, 241], strides = [1, 1]} : vector<8x256xf32> to vector<8x241xf32>
    %cst_71 = arith.constant 0.000000e+00 : f32
    %280 = vector.broadcast %cst_71 : f32 to vector<8x15xf32>
    %281 = tpu.concatenate %279, %280 in 1 : vector<8x241xf32>, vector<8x15xf32> -> vector<8x256xf32>
    %282 = vector.extract_strided_slice %245 {offsets = [6, 0], sizes = [1, 256], strides = [1, 1]} : vector<9x256xf32> to vector<1x256xf32>
    %283 = vector.broadcast %282 : vector<1x256xf32> to vector<8x256xf32>
    %284 = arith.mulf %281, %283 : vector<8x256xf32>
    %285 = vector.extract_strided_slice %243 {offsets = [0, 16], sizes = [8, 240], strides = [1, 1]} : vector<8x256xf32> to vector<8x240xf32>
    %cst_72 = arith.constant 0.000000e+00 : f32
    %286 = vector.broadcast %cst_72 : f32 to vector<8x16xf32>
    %287 = tpu.concatenate %285, %286 in 1 : vector<8x240xf32>, vector<8x16xf32> -> vector<8x256xf32>
    %288 = vector.extract_strided_slice %245 {offsets = [7, 0], sizes = [1, 256], strides = [1, 1]} : vector<9x256xf32> to vector<1x256xf32>
    %289 = vector.broadcast %288 : vector<1x256xf32> to vector<8x256xf32>
    %290 = arith.mulf %287, %289 : vector<8x256xf32>
    %291 = vector.extract_strided_slice %243 {offsets = [0, 17], sizes = [8, 239], strides = [1, 1]} : vector<8x256xf32> to vector<8x239xf32>
    %cst_73 = arith.constant 0.000000e+00 : f32
    %292 = vector.broadcast %cst_73 : f32 to vector<8x17xf32>
    %293 = tpu.concatenate %291, %292 in 1 : vector<8x239xf32>, vector<8x17xf32> -> vector<8x256xf32>
    %294 = vector.extract_strided_slice %245 {offsets = [8, 0], sizes = [1, 256], strides = [1, 1]} : vector<9x256xf32> to vector<1x256xf32>
    %295 = vector.broadcast %294 : vector<1x256xf32> to vector<8x256xf32>
    %296 = arith.mulf %293, %295 : vector<8x256xf32>
    %297 = tpu.concatenate %251, %257, %263, %269, %272, %278, %284, %290, %296 in 0 : vector<8x256xf32>, vector<8x256xf32>, vector<8x256xf32>, vector<8x256xf32>, vector<8x256xf32>, vector<8x256xf32>, vector<8x256xf32>, vector<8x256xf32>, vector<8x256xf32> -> vector<72x256xf32>
    %cst_74 = arith.constant dense<0.000000e+00> : vector<12x256xf32>
    %298 = tpu.matmul %244, %297, %cst_74 {dimension_numbers = #tpu.dot_dimension_numbers<[1], [0], [0], [1], [0, 0, 1, 1], [], []>} : vector<12x72xf32>, vector<72x256xf32>, vector<12x256xf32> -> vector<12x256xf32>
    %299 = math.tanh %298 : vector<12x256xf32>
    %c0_75 = arith.constant 0 : index
    %c0_76 = arith.constant 0 : index
    %c0_77 = arith.constant 0 : index
    %300 = vector.load %arg11[%c0_75, %c0_76, %c0_77] : memref<1x12x256xf32, #tpu.memory_space<vmem>>, vector<1x12x256xf32>
    %301 = vector.shape_cast %300 : vector<1x12x256xf32> to vector<12x256xf32>
    %302 = vector.shape_cast %299 : vector<12x256xf32> to vector<1x12x256xf32>
    tpu.vector_store %arg11[%c0_75, %c0_76, %c0_77], %302 {strides = array<i32>} : memref<1x12x256xf32, #tpu.memory_space<vmem>>, vector<1x12x256xf32>,
    return
  }
  func.func @transform_0(%arg0: i32) -> (i32, i32, i32) {
    %c0_i32 = arith.constant 0 : i32
    %c0_i32_0 = arith.constant 0 : i32
    %c0_i32_1 = arith.constant 0 : i32
    return %arg0, %c0_i32, %c0_i32_0 : i32, i32, i32
  }
  func.func @transform_1(%arg0: i32) -> (i32, i32) {
    %c0_i32 = arith.constant 0 : i32
    %c0_i32_0 = arith.constant 0 : i32
    %c0_i32_1 = arith.constant 0 : i32
    return %c0_i32, %c0_i32_0 : i32, i32
  }
  func.func @transform_2(%arg0: i32) -> (i32, i32) {
    %c0_i32 = arith.constant 0 : i32
    %c0_i32_0 = arith.constant 0 : i32
    %c0_i32_1 = arith.constant 0 : i32
    return %c0_i32, %c0_i32_0 : i32, i32
  }
  func.func @transform_3(%arg0: i32) -> (i32, i32) {
    %c0_i32 = arith.constant 0 : i32
    %c0_i32_0 = arith.constant 0 : i32
    %c0_i32_1 = arith.constant 0 : i32
    return %c0_i32, %c0_i32_0 : i32, i32
  }
  func.func @transform_4(%arg0: i32) -> (i32, i32) {
    %c0_i32 = arith.constant 0 : i32
    %c0_i32_0 = arith.constant 0 : i32
    %c0_i32_1 = arith.constant 0 : i32
    return %c0_i32, %c0_i32_0 : i32, i32
  }
  func.func @transform_5(%arg0: i32) -> (i32, i32) {
    %c0_i32 = arith.constant 0 : i32
    %c0_i32_0 = arith.constant 0 : i32
    %c0_i32_1 = arith.constant 0 : i32
    return %c0_i32, %c0_i32_0 : i32, i32
  }
  func.func @transform_6(%arg0: i32) -> (i32, i32) {
    %c0_i32 = arith.constant 0 : i32
    %c0_i32_0 = arith.constant 0 : i32
    %c0_i32_1 = arith.constant 0 : i32
    return %c0_i32, %c0_i32_0 : i32, i32
  }
  func.func @transform_7(%arg0: i32) -> (i32, i32) {
    %c0_i32 = arith.constant 0 : i32
    %c0_i32_0 = arith.constant 0 : i32
    %c0_i32_1 = arith.constant 0 : i32
    return %c0_i32, %c0_i32_0 : i32, i32
  }
  func.func @transform_8(%arg0: i32) -> (i32, i32) {
    %c0_i32 = arith.constant 0 : i32
    %c0_i32_0 = arith.constant 0 : i32
    %c0_i32_1 = arith.constant 0 : i32
    return %c0_i32, %c0_i32_0 : i32, i32
  }
  func.func @transform_9(%arg0: i32) -> (i32, i32) {
    %c0_i32 = arith.constant 0 : i32
    %c0_i32_0 = arith.constant 0 : i32
    %c0_i32_1 = arith.constant 0 : i32
    return %c0_i32, %c0_i32_0 : i32, i32
  }
  func.func @transform_10(%arg0: i32) -> (i32, i32, i32) {
    %c0_i32 = arith.constant 0 : i32
    %c0_i32_0 = arith.constant 0 : i32
    %c0_i32_1 = arith.constant 0 : i32
    return %arg0, %c0_i32, %c0_i32_0 : i32, i32, i32
  }
}

</mosaic_0001>

<bundles_post_ra>
// kernel: generator_forward.1
= control target key start
LH: loop header
LB: loop body
LE: loop exit
PB: predicated region body
PF: predicated region fallthrough
CT: control target
= control target key end

     0   :  { %s3961_s0 = inlined_call_operand.vmem [shape: f32[2,8,1], index: 0, kind: input, shape index: {}]   ;;  %s3962_s1 = inlined_call_operand.vmem [shape: f32[256,16], index: 1, kind: input, shape index: {}]   ;;  %s3963_s2 = inlined_call_operand.hbm [shape: f32[64,288], index: 2, kind: input, shape index: {}]   ;;  %s3964_s3 = inlined_call_operand.hbm [shape: f32[9,16], index: 3, kind: input, shape index: {}]   ;;  %s3965_s4 = inlined_call_operand.hbm [shape: f32[64,64], index: 4, kind: input, shape index: {}]   ;;  %s3966_s5 = inlined_call_operand.hbm [shape: f32[32,144], index: 5, kind: input, shape index: {}]   ;;  %s3967_s6 = inlined_call_operand.hbm [shape: f32[9,64], index: 6, kind: input, shape index: {}]   ;;  %s3968_s7 = inlined_call_operand.hbm [shape: f32[256,256], index: 7, kind: input, shape index: {}]   ;;  %s3969_s8 = inlined_call_operand.hbm [shape: f32[12,72], index: 8, kind: input, shape index: {}]   ;;  %s3970_s9 = inlined_call_operand.hbm [shape: f32[9,256], index: 9, kind: input, shape index: {}]   ;;  %s3971_s10 = inlined_call_operand.vmem [shape: f32[2,12,256], index: 10, kind: output, shape index: {}]  }
   0x1   :  { %3980 = sst [smem:[#allocation20_spill]] %s3964_s3 }
   0x2   :  { %15 = vsyncpa [#allocation3], 0 }
   0x3   :  { %16 = vsyncpa [#allocation5], 0 }
   0x4   :  { %17 = vsyncpa [#allocation8], 0 }
   0x5   :  { %18 = vsyncpa [#allocation11], 0 }
   0x6   :  { %19 = vsyncpa [#allocation14], 0  ;;  %s3372_s13 = smov 0  }
   0x7 LB: > { %s3281_s14 = smov [#allocation4]   ;;  %s3378_s16 = sadd.s32 4294967295, %s3279_s13   ;;  %s3279_s13 = sphi %s3372_s13, %s25_s13  }
   0x8   : > { %s299_s15 = sshll.u32 %s3281_s14, 4  ;;  %p2512_p0 = scmp.ge.s32.totalorder %s3279_s13, 1  ;;  %s3383_s15 = int_to_ptr.vmem [resolvable:$true] %s299_s15 }
   0x9   : > { %p271_p1 = scmp.lt.s32.totalorder %s3279_s13, 3  ;;  %p3976_p2 = scmp.eq.s32.totalorder %s3378_s16, 0 }
   0xa   : > { %s3282_s18 = smov [#allocation7]   ;;  %s3283_s21 = smov [#allocation10]  }
   0xb   : > { %p3385_p3 = pnand %p2512_p0, %p271_p1  ;;  %s325_s19 = sshll.u32 %s3282_s18, 4  ;;  %s3391_s19 = int_to_ptr.vmem [resolvable:$true] %s325_s19 }
   0xc   : > { %s3399_s22 = sshll.u32 %s3283_s21, 4  ;;  %s3983_s3 = sld [smem:[#allocation20_spill]]  ;;  %s352_s22 = int_to_ptr.vmem [resolvable:$true] %s3399_s22 }
   0xd   : > { %s3981_s17 = scalar_select %p3385_p3, 1, 0 }
   0xe   : > { %p2922_p4 = pneg %p3385_p3 }
  0x10   : > { %p3395_p5 = pnand %p3976_p2, %p2922_p4 }
  0x12   : > { %s3029_s25 = scalar_lea.hbm %s3983_s3, 256  ;;  %p3409_p7 = pneg %p3395_p5 }
  0x13   : > { %p3030_p6 = scmp.ne.s32.totalorder %s3983_s3, %s3029_s25  ;;  %p3036_p10 = scmp.lt.u32.totalorder %s3029_s25, %s3983_s3 }
  0x15   : > { %p3032_p8 = pnand %p3409_p7, %p3030_p6 }
  0x17   : > { %p3033_p9 = pneg %p3032_p8 }
  0x19   : > { %p3038_p11 = pnand %p3036_p10, %p3033_p9 }
  0x1b   : > { %3041 = shalt.err (!%p3038_p11)
}
  0x1c   : > { %s3042_s11 = scalar_lea.vmem %s3383_s15, 256  ;;  %p3050_p1 = scmp.lt.s32.totalorder %s3383_s15, %s3383_s15 }
  0x1d   : > { %p3043_p12 = scmp.ne.s32.totalorder %s3383_s15, %s3042_s11  ;;  %p3051_p4 = scmp.lt.s32.totalorder %s3042_s11, %s3042_s11 }
  0x1f   : > { %p3045_p13 = pnand %p3043_p12, %p3409_p7  ;;  %p3052_p6 = por %p3051_p4, %p3050_p1 }
  0x21   : > { %p3046_p0 = pneg %p3045_p13 }
  0x23   : > { %p3053_p8 = pnand %p3052_p6, %p3046_p0 }
  0x25   : > { %3056 = shalt.err (!%p3053_p8)
}
  0x26   : > { %s3972_s12 = smov 128   ;;  %s3974_s14 = smov 8  }
  0x27   : > { %2928 = dma.hbm_to_vmem [thread:$0]  (!%p3395_p5), %s3983_s3, 256, %s3383_s15, [#allocation5], %s3972_s12, %s3972_s12, %s3974_s14  }
  0x28   : > { %s3057_s25 = scalar_lea.hbm %s3966_s5, 1024 }
  0x29   : > { %p3058_p9 = scmp.ne.s32.totalorder %s3966_s5, %s3057_s25  ;;  %p3064_p12 = scmp.lt.u32.totalorder %s3057_s25, %s3966_s5 }
  0x2b   : > { %p3060_p10 = pnand %p3058_p9, %p3409_p7 }
  0x2d   : > { %p3061_p11 = pneg %p3060_p10 }
  0x2f   : > { %p3066_p13 = pnand %p3064_p12, %p3061_p11 }
  0x31   : > { %3069 = shalt.err (!%p3066_p13)
}
  0x32   : > { %s3070_s15 = scalar_lea.vmem %s3391_s19, 1024  ;;  %p3078_p6 = scmp.lt.s32.totalorder %s3391_s19, %s3391_s19 }
  0x33   : > { %p3071_p0 = scmp.ne.s32.totalorder %s3391_s19, %s3070_s15  ;;  %p3079_p8 = scmp.lt.s32.totalorder %s3070_s15, %s3070_s15 }
  0x35   : > { %p3073_p1 = pnand %p3071_p0, %p3409_p7  ;;  %p3080_p9 = por %p3079_p8, %p3078_p6 }
  0x37   : > { %p3074_p4 = pneg %p3073_p1 }
  0x39   : > { %p3081_p10 = pnand %p3080_p9, %p3074_p4 }
  0x3b   : > { %3084 = shalt.err (!%p3081_p10)
}
  0x3c   : > { %s3978_s11 = smov 256   ;;  %s3979_s18 = smov 16  }
  0x3d   : > { %2934 = dma.hbm_to_vmem [thread:$0]  (!%p3395_p5), %s3966_s5, 1024, %s3391_s19, [#allocation8], %s3978_s11, %s3978_s11, %s3979_s18  }
  0x3e   : > { %s3288_s24 = smov [#allocation2]   ;;  %s3085_s29 = scalar_lea.hbm %s3968_s7, 8192 }
  0x3f   : > { %s286_s25 = sshll.u32 %s3288_s24, 4  ;;  %p3086_p11 = scmp.ne.s32.totalorder %s3968_s7, %s3085_s29  ;;  %s287_s25 = int_to_ptr.vmem [resolvable:$true] %s286_s25 }
  0x40   : > { %p3092_p0 = scmp.lt.u32.totalorder %s3085_s29, %s3968_s7 }
  0x41   : > { %p3088_p12 = pnand %p3086_p11, %p3409_p7 }
  0x43   : > { %p3089_p13 = pneg %p3088_p12 }
  0x45   : > { %p3094_p1 = pnand %p3092_p0, %p3089_p13 }
  0x47   : > { %3097 = shalt.err (!%p3094_p1)
}
  0x48   : > { %s3098_s19 = scalar_lea.vmem %s352_s22, 8192  ;;  %p3106_p9 = scmp.lt.s32.totalorder %s352_s22, %s352_s22 }
  0x49   : > { %p3099_p4 = scmp.ne.s32.totalorder %s352_s22, %s3098_s19  ;;  %p3107_p10 = scmp.lt.s32.totalorder %s3098_s19, %s3098_s19 }
  0x4b   : > { %p3101_p6 = pnand %p3099_p4, %p3409_p7  ;;  %p3108_p2 = por %p3107_p10, %p3106_p9 }
  0x4d   : > { %p3102_p8 = pneg %p3101_p6 }
  0x4f   : > { %p3109_p3 = pnand %p3108_p2, %p3102_p8 }
  0x51   : > { %3112 = shalt.err (!%p3109_p3)
}
  0x52   : > { %2940 = dma.hbm_to_vmem [thread:$0]  (!%p3395_p5), %s3968_s7, 8192, %s352_s22, [#allocation11], %s3978_s11, %s3978_s11, %s3979_s18  }
  0x53   : > { %s3113_s24 = scalar_lea.hbm %s3963_s2, 3072 }
  0x54   : > { %p3114_p2 = scmp.ne.s32.totalorder %s3963_s2, %s3113_s24  ;;  %p3120_p12 = scmp.lt.u32.totalorder %s3113_s24, %s3963_s2 }
  0x56   : > { %p3116_p3 = pnand %p3114_p2, %p3409_p7 }
  0x58   : > { %p3117_p11 = pneg %p3116_p3 }
  0x5a   : > { %p3122_p13 = pnand %p3120_p12, %p3117_p11 }
  0x5c   : > { %3125 = shalt.err (!%p3122_p13)
}
  0x5d   : > { %s3126_s15 = scalar_lea.vmem %s287_s25, 3072  ;;  %p3134_p6 = scmp.lt.s32.totalorder %s287_s25, %s287_s25 }
  0x5e   : > { %p3127_p0 = scmp.ne.s32.totalorder %s287_s25, %s3126_s15  ;;  %p3135_p8 = scmp.lt.s32.totalorder %s3126_s15, %s3126_s15 }
  0x60   : > { %p3129_p1 = pnand %p3127_p0, %p3409_p7  ;;  %p3136_p9 = por %p3135_p8, %p3134_p6 }
  0x62   : > { %p3130_p4 = pneg %p3129_p1 }
  0x64   : > { %p3137_p10 = pnand %p3136_p9, %p3130_p4 }
  0x66   : > { %3140 = shalt.err (!%p3137_p10)
}
  0x67   : > { %s3289_s22 = smov 384   ;;  %s3290_s19 = smov 24  }
  0x68   : > { %2925 = dma.hbm_to_vmem [thread:$0]  (!%p3395_p5), %s3963_s2, 3072, %s287_s25, [#allocation3], %s3289_s22, %s3289_s22, %s3290_s19  }
  0x69   : > { %s3291_s21 = smov [#allocation6]   ;;  %s3292_s24 = smov [#allocation9]  }
  0x6a   : > { %s312_s23 = sshll.u32 %s3291_s21, 4  ;;  %s338_s26 = sshll.u32 %s3292_s24, 4  ;;  %s313_s23 = int_to_ptr.vmem [resolvable:$true] %s312_s23  ;;  %s339_s26 = int_to_ptr.vmem [resolvable:$true] %s338_s26 }
  0x6b   : > { %s3141_s30 = scalar_lea.hbm %s3965_s4, 1024 }
  0x6c   : > { %p3142_p2 = scmp.ne.s32.totalorder %s3965_s4, %s3141_s30  ;;  %p3148_p12 = scmp.lt.u32.totalorder %s3141_s30, %s3965_s4 }
  0x6e   : > { %p3144_p3 = pnand %p3142_p2, %p3409_p7 }
  0x70   : > { %p3145_p11 = pneg %p3144_p3 }
  0x72   : > { %p3150_p13 = pnand %p3148_p12, %p3145_p11 }
  0x74   : > { %3153 = shalt.err (!%p3150_p13)
}
  0x75   : > { %s3154_s25 = scalar_lea.vmem %s313_s23, 1024  ;;  %p3162_p6 = scmp.lt.s32.totalorder %s313_s23, %s313_s23 }
  0x76   : > { %p3155_p0 = scmp.ne.s32.totalorder %s313_s23, %s3154_s25  ;;  %p3163_p8 = scmp.lt.s32.totalorder %s3154_s25, %s3154_s25 }
  0x78   : > { %p3157_p1 = pnand %p3155_p0, %p3409_p7  ;;  %p3164_p9 = por %p3163_p8, %p3162_p6 }
  0x7a   : > { %p3158_p4 = pneg %p3157_p1 }
  0x7c   : > { %p3165_p10 = pnand %p3164_p9, %p3158_p4 }
  0x7e   : > { %3168 = shalt.err (!%p3165_p10)
}
  0x7f   : > { %s3985_s11 = smov 8   ;;  %s3986_s22 = smov 128  }
  0x80   : > { %2931 = dma.hbm_to_vmem [thread:$0]  (!%p3395_p5), %s3965_s4, 1024, %s313_s23, [#allocation5], %s3986_s22, %s3986_s22, %s3985_s11  }
  0x81   : > { %s3169_s14 = scalar_lea.hbm %s3967_s6, 256 }
  0x82   : > { %p3170_p2 = scmp.ne.s32.totalorder %s3967_s6, %s3169_s14  ;;  %p3176_p12 = scmp.lt.u32.totalorder %s3169_s14, %s3967_s6 }
  0x84   : > { %p3172_p3 = pnand %p3170_p2, %p3409_p7 }
  0x86   : > { %p3173_p11 = pneg %p3172_p3 }
  0x88   : > { %p3178_p13 = pnand %p3176_p12, %p3173_p11 }
  0x8a   : > { %3181 = shalt.err (!%p3178_p13)
}
  0x8b   : > { %s3182_s30 = scalar_lea.vmem %s339_s26, 256  ;;  %p3190_p6 = scmp.lt.s32.totalorder %s339_s26, %s339_s26 }
  0x8c   : > { %p3183_p0 = scmp.ne.s32.totalorder %s339_s26, %s3182_s30  ;;  %p3191_p8 = scmp.lt.s32.totalorder %s3182_s30, %s3182_s30 }
  0x8e   : > { %p3185_p1 = pnand %p3183_p0, %p3409_p7  ;;  %p3192_p9 = por %p3191_p8, %p3190_p6 }
  0x90   : > { %p3186_p4 = pneg %p3185_p1 }
  0x92   : > { %p3193_p10 = pnand %p3192_p9, %p3186_p4 }
  0x94   : > { %3196 = shalt.err (!%p3193_p10)
}
  0x95   : > { %2937 = dma.hbm_to_vmem [thread:$0]  (!%p3395_p5), %s3967_s6, 256, %s339_s26, [#allocation8], %s3986_s22, %s3986_s22, %s3985_s11  }
  0x96   : > { %s3293_s25 = smov [#allocation12]   ;;  %s3294_s18 = smov [#allocation13]  }
  0x97   : > { %s364_s3 = sshll.u32 %s3293_s25, 4  ;;  %s377_s19 = sshll.u32 %s3294_s18, 4  ;;  %s365_s3 = int_to_ptr.vmem [resolvable:$true] %s364_s3  ;;  %s378_s19 = int_to_ptr.vmem [resolvable:$true] %s377_s19 }
  0x98   : > { %s3197_s21 = scalar_lea.hbm %s3969_s8, 256 }
  0x99   : > { %p3198_p2 = scmp.ne.s32.totalorder %s3969_s8, %s3197_s21  ;;  %p3204_p12 = scmp.lt.u32.totalorder %s3197_s21, %s3969_s8 }
  0x9b   : > { %p3200_p3 = pnand %p3198_p2, %p3409_p7 }
  0x9d   : > { %p3201_p11 = pneg %p3200_p3 }
  0x9f   : > { %p3206_p13 = pnand %p3204_p12, %p3201_p11 }
  0xa1   : > { %3209 = shalt.err (!%p3206_p13)
}
  0xa2   : > { %s3210_s26 = scalar_lea.vmem %s365_s3, 256  ;;  %p3218_p6 = scmp.lt.s32.totalorder %s365_s3, %s365_s3 }
  0xa3   : > { %p3211_p0 = scmp.ne.s32.totalorder %s365_s3, %s3210_s26  ;;  %p3219_p8 = scmp.lt.s32.totalorder %s3210_s26, %s3210_s26 }
  0xa5   : > { %p3213_p1 = pnand %p3211_p0, %p3409_p7  ;;  %p3220_p9 = por %p3219_p8, %p3218_p6 }
  0xa7   : > { %p3214_p4 = pneg %p3213_p1 }
  0xa9   : > { %p3221_p10 = pnand %p3220_p9, %p3214_p4 }
  0xab   : > { %3224 = shalt.err (!%p3221_p10)
}
  0xac   : > { %2943 = dma.hbm_to_vmem [thread:$0]  (!%p3395_p5), %s3969_s8, 256, %s365_s3, [#allocation11], %s3986_s22, %s3986_s22, %s3985_s11  }
  0xad   : > { %s3225_s12 = scalar_lea.hbm %s3970_s9, 512 }
  0xae   : > { %p3226_p2 = scmp.ne.s32.totalorder %s3970_s9, %s3225_s12  ;;  %p3232_p12 = scmp.lt.u32.totalorder %s3225_s12, %s3970_s9 }
  0xb0   : > { %p3228_p3 = pnand %p3226_p2, %p3409_p7 }
  0xb2   : > { %p3229_p11 = pneg %p3228_p3 }
  0xb4   : > { %p3234_p13 = pnand %p3232_p12, %p3229_p11 }
  0xb6   : > { %3237 = shalt.err (!%p3234_p13)
}
  0xb7   : > { %s3238_s29 = scalar_lea.vmem %s378_s19, 512  ;;  %p3246_p6 = scmp.lt.s32.totalorder %s378_s19, %s378_s19 }
  0xb8   : > { %p3239_p0 = scmp.ne.s32.totalorder %s378_s19, %s3238_s29  ;;  %p3247_p8 = scmp.lt.s32.totalorder %s3238_s29, %s3238_s29 }
  0xba   : > { %p3241_p1 = pnand %p3239_p0, %p3409_p7  ;;  %p3248_p9 = por %p3247_p8, %p3246_p6 }
  0xbc   : > { %p3242_p4 = pneg %p3241_p1 }
  0xbe   : > { %p3249_p10 = pnand %p3248_p9, %p3242_p4 }
  0xc0   : > { %3252 = shalt.err (!%p3249_p10)
}
  0xc1   : > { %s3987_s11 = smov 16   ;;  %s3988_s22 = smov 256  }
  0xc2   : > { %2946 = dma.hbm_to_vmem [thread:$0]  (!%p3395_p5), %s3970_s9, 512, %s378_s19, [#allocation14], %s3988_s22, %s3988_s22, %s3987_s11  }
  0xc3   : > { %p3989_p2 = scmp.ne.s32.totalorder %s3981_s17, 0 }
  0xc4   : > { %p3990_p7 = scmp.eq.s32.totalorder (!%p3989_p2), %s3378_s16, 0 }
  0xc5   : > { %400 = sbr.rel (%p3989_p2) target bundleno = 2898 (0xb52), region = 60 }
  0xcc   : > { %3258 = dma.done.wait (%p3990_p7), [#allocation3], 3072   ;;  %p3991_p3 = pmov %p3990_p7 }
  0xce   : > { %3260 = vsyncadd (%p3991_p3), [#allocation3], 4294964224  ;;  %p3992_p11 = pmov %p3991_p3 }
  0xcf   : > { %p3993_p12 = pmov %p3991_p3 }
  0xd0   : > { %3262 = dma.done.wait (%p3992_p11), [#allocation5], 1280  }
  0xd1   : > { %3264 = vsyncadd (%p3993_p12), [#allocation5], 4294966016  ;;  %p3994_p13 = pmov %p3991_p3 }
  0xd2   : > { %p3995_p5 = pmov %p3991_p3 }
  0xd3   : > { %3266 = dma.done.wait (%p3994_p13), [#allocation8], 1280  }
  0xd4   : > { %3268 = vsyncadd (%p3995_p5), [#allocation8], 4294966016  ;;  %p3996_p0 = pmov %p3991_p3 }
  0xd6   : > { %3270 = dma.done.wait (%p3996_p0), [#allocation11], 8448   ;;  %p3997_p1 = pmov %p3996_p0 }
  0xd7   : > { %p3998_p4 = pmov %p3996_p0 }
  0xd8   : > { %3272 = vsyncadd (%p3997_p1), [#allocation11], 4294958848 }
  0xd9   : > { %3274 = dma.done.wait (%p3998_p4), [#allocation14], 512   ;;  %p3999_p6 = pmov %p3996_p0 }
  0xda   : > { %p465_p8 = scmp.lt.s32.totalorder %s3378_s16, 1  ;;  %v475_v8 = vld [vmem:[%s3962_s1] sm:$0xff]  ;;  %v476_v9 = vld [vmem:[%s3962_s1 + $0x8] sm:$0xff]  ;;  %v477_v10 = vld [vmem:[%s3962_s1 + $0x10] sm:$0xff]  ;;  %vm603_vm0 = vcmask 130048   ;;  %s3296_s20 = smov 127  }
  0xdb   : > { %3276 = vsyncadd (%p3999_p6), [#allocation14], 4294966784  ;;  %v478_v11 = vld [vmem:[%s3962_s1 + $0x18] sm:$0xff]  ;;  %v479_v12 = vld [vmem:[%s3962_s1 + $0x20] sm:$0xff]  ;;  %s3297_s26 = smov 4   ;;  %s3298_s23 = smov 125  }
  0xdc   : > { %s4001_s16 = smov (!%p465_p8, %s3378_s16), 1  ;;  %v480_v14 = vld [vmem:[%s3962_s1 + $0x28] sm:$0xff]  ;;  %v481_v15 = vld [vmem:[%s3962_s1 + $0x30] sm:$0xff]  ;;  %v482_v16 = vld [vmem:[%s3962_s1 + $0x38] sm:$0xff]  ;;  %s3299_s15 = smov 3   ;;  %vm899_vm1 = vcmask 261120  }
  0xdd   : > { %s2531_s17 = sshll.u32 %s4001_s16, 3  ;;  %v483_v22 = vld [vmem:[%s3962_s1 + $0x40] sm:$0xff]  ;;  %v484_v23 = vld [vmem:[%s3962_s1 + $0x48] sm:$0xff]  ;;  %v485_v24 = vld [vmem:[%s3962_s1 + $0x50] sm:$0xff]  ;;  %s3300_s25 = smov 124   ;;  %vm703_vm2 = vcmask 39936  }
  0xde   : > { %s468_s19 = scalar_lea.vmem %s3961_s0, %s2531_s17  ;;  %v486_v29 = vld [vmem:[%s3962_s1 + $0x58] sm:$0xff]  ;;  %v487_v30 = vld [vmem:[%s3962_s1 + $0x60] sm:$0xff]  ;;  %v488_v31 = vld [vmem:[%s3962_s1 + $0x68] sm:$0xff]  ;;  %s3295_s17 = smov 5   ;;  %vm811_vm3 = vcmask 121856   ;;  %vm728_vm4 = vcmask 31744  }
  0xdf   : > { %v474_v0 = vld [vmem:[%s468_s19] sm:$0xff]  ;;  %v489_v33 = vld [vmem:[%s3962_s1 + $0x70] sm:$0xff]  ;;  %v490_v34 = vld [vmem:[%s3962_s1 + $0x78] sm:$0xff]  ;;  %vm836_vm5 = vcmask 105472   ;;  %vm753_vm6 = vcmask 23552   ;;  %vm861_vm7 = vcmask 97280  }
  0xe0   : > { %2874 = vpush %v474_v0  ;;  %v519_v1 = vrot.slane %v474_v0, 1  ;;  %v531_v2 = vrot.slane %v474_v0, 2  ;;  %v543_v3 = vrot.slane %v474_v0, 3  ;;  %v555_v4 = vrot.slane %v474_v0, 4  ;;  %v491_v44 = vld [vmem:[%s3962_s1 + $0x80] sm:$0xff]  ;;  %v492_v45 = vld [vmem:[%s3962_s1 + $0x88] sm:$0xff] }
  0xe1   : > { %v567_v5 = vrot.slane %v474_v0, 5  ;;  %v579_v6 = vrot.slane %v474_v0, 6  ;;  %v591_v7 = vrot.slane %v474_v0, 7  ;;  %v493_v50 = vld [vmem:[%s3962_s1 + $0x90] sm:$0xff]  ;;  %v494_v51 = vld [vmem:[%s3962_s1 + $0x98] sm:$0xff]  ;;  %v495_v52 = vld [vmem:[%s3962_s1 + $0xa0] sm:$0xff] }
  0xe2   : > { %2876 = vpush %v519_v1  ;;  %v496_v57 = vld [vmem:[%s3962_s1 + $0xa8] sm:$0xff]  ;;  %v497_v58 = vld [vmem:[%s3962_s1 + $0xb0] sm:$0xff]  ;;  %v498_v59 = vld [vmem:[%s3962_s1 + $0xb8] sm:$0xff]  ;;  %vm778_vm8 = vcmask 7168   ;;  %vm886_vm9 = vcmask 89088   ;;  %vm1470_vm10 = vcmask 523264  }
  0xe3   : > { %2878 = vpush %v531_v2  ;;  %s3306_s14 = smov 8   ;;  %s3307_s21 = smov 121   ;;  %vm1518_vm11 = vcmask 72704   ;;  %vm1533_vm12 = vcmask 64512   ;;  %vm1548_vm13 = vcmask 56320   ;;  %vm1583_vm14 = vcmask 515072  }
  0xe4   : > { %2880 = vpush %v543_v3  ;;  %s3309_s27 = smov 119   ;;  %vm1598_vm15 = vcmask 465920   ;;  %s3311_s29 = smov 17  }
  0xe5   : > { %2882 = vpush %v555_v4  ;;  %v499_v4 = vld [vmem:[%s3962_s1 + $0xc0] sm:$0xff]  ;;  %s3314_s3 = smov 112   ;;  %s3315_s30 = smov 113  }
  0xe6   : > { %2884 = vpush %v567_v5 }
  0xe7   : > { %2886 = vpush %v579_v6 }
  0xe8   : > { %2888 = vpush %v591_v7 }
 0x111   : > { %s2875_s24 = spop %2874 }
 0x112   : > { %v509_v13 = vstv %s2875_s24  ;;  %s3308_s24 = smov 120  }
 0x113   : > { %v511_v17 = vmul.f32 %v509_v13, %v475_v8  ;;  %v512_v18 = vmul.f32 %v509_v13, %v476_v9  ;;  %v513_v19 = vmul.f32 %v509_v13, %v477_v10  ;;  %v514_v20 = vmul.f32 %v509_v13, %v478_v11  ;;  %s2877_s28 = spop %2876  ;;  %v500_v9 = vld [vmem:[%s3962_s1 + $0xc8] sm:$0xff]  ;;  %v501_v10 = vld [vmem:[%s3962_s1 + $0xd0] sm:$0xff]  ;;  %v502_v11 = vld [vmem:[%s3962_s1 + $0xd8] sm:$0xff] }
 0x114   : > { %v521_v21 = vstv %s2877_s28  ;;  %s2879_s12 = spop %2878 }
 0x115   : > { %v523_v25 = vmul.f32 %v521_v21, %v479_v12  ;;  %v524_v26 = vmul.f32 %v521_v21, %v480_v14  ;;  %v525_v27 = vmul.f32 %v521_v21, %v481_v15  ;;  %v526_v28 = vmul.f32 %v521_v21, %v482_v16  ;;  %s2881_s22 = spop %2880  ;;  %v505_v16 = vld [vmem:[%s3962_s1 + $0xf0] sm:$0xff]  ;;  %v503_v21 = vld [vmem:[%s3962_s1 + $0xe0] sm:$0xff] }
 0x116   : > { %v533_v32 = vstv %s2879_s12  ;;  %v545_v35 = vstv %s2881_s22  ;;  %s2883_s28 = spop %2882  ;;  %s3301_s12 = smov 1  }
 0x117   : > { %v527_v36 = vadd.f32 %v523_v25, %v511_v17  ;;  %v528_v37 = vadd.f32 %v524_v26, %v512_v18  ;;  %v529_v38 = vadd.f32 %v525_v27, %v513_v19  ;;  %v530_v39 = vadd.f32 %v526_v28, %v514_v20  ;;  %s2885_s19 = spop %2884  ;;  %v506_v26 = vld [vmem:[%s3962_s1 + $0xf8] sm:$0xff]  ;;  %v504_v27 = vld [vmem:[%s3962_s1 + $0xe8] sm:$0xff]  ;;  %s3313_s22 = smov 15  }
 0x118   : > { %v535_v40 = vmul.f32 %v533_v32, %v483_v22  ;;  %v536_v41 = vmul.f32 %v533_v32, %v484_v23  ;;  %v537_v42 = vmul.f32 %v533_v32, %v485_v24  ;;  %v538_v43 = vmul.f32 %v533_v32, %v486_v29  ;;  %s2887_s18 = spop %2886 }
 0x119   : > { %v547_v46 = vmul.f32 %v545_v35, %v487_v30  ;;  %v548_v47 = vmul.f32 %v545_v35, %v488_v31  ;;  %v549_v48 = vmul.f32 %v545_v35, %v489_v33  ;;  %v550_v49 = vmul.f32 %v545_v35, %v490_v34  ;;  %s2889_s11 = spop %2888 }
 0x11a   : > { %v539_v53 = vadd.f32 %v535_v40, %v527_v36  ;;  %v540_v54 = vadd.f32 %v536_v41, %v528_v37  ;;  %v541_v55 = vadd.f32 %v537_v42, %v529_v38  ;;  %v542_v56 = vadd.f32 %v538_v43, %v530_v39 }
 0x11b   : > { %v557_v60 = vstv %s2883_s28  ;;  %v569_v61 = vstv %s2885_s19  ;;  %v581_v62 = vstv %s2887_s18  ;;  %v593_v63 = vstv %s2889_s11  ;;  %s3302_s28 = smov 123   ;;  %s3304_s19 = smov 9  }
 0x11c   : > { %v551_v0 = vadd.f32 %v547_v46, %v539_v53  ;;  %v552_v1 = vadd.f32 %v548_v47, %v540_v54  ;;  %v553_v2 = vadd.f32 %v549_v48, %v541_v55  ;;  %v554_v3 = vadd.f32 %v550_v49, %v542_v56  ;;  %s3305_s18 = smov 7   ;;  %s3312_s11 = smov 16  }
 0x11d   : > { %v559_v5 = vmul.f32 %v557_v60, %v491_v44  ;;  %v560_v6 = vmul.f32 %v557_v60, %v492_v45  ;;  %v561_v7 = vmul.f32 %v557_v60, %v493_v50  ;;  %v562_v8 = vmul.f32 %v557_v60, %v494_v51 }
 0x11e   : > { %v571_v12 = vmul.f32 %v569_v61, %v495_v52  ;;  %v572_v13 = vmul.f32 %v569_v61, %v496_v57  ;;  %v573_v14 = vmul.f32 %v569_v61, %v497_v58  ;;  %v574_v15 = vmul.f32 %v569_v61, %v498_v59 }
 0x11f   : > { %v563_v17 = vadd.f32 %v559_v5, %v551_v0  ;;  %v564_v18 = vadd.f32 %v560_v6, %v552_v1  ;;  %v565_v19 = vadd.f32 %v561_v7, %v553_v2  ;;  %v566_v20 = vadd.f32 %v562_v8, %v554_v3 }
 0x120   : > { %v583_v22 = vmul.f32 %v581_v62, %v499_v4  ;;  %v584_v23 = vmul.f32 %v581_v62, %v500_v9  ;;  %v585_v24 = vmul.f32 %v581_v62, %v501_v10  ;;  %v586_v25 = vmul.f32 %v581_v62, %v502_v11 }
 0x121   : > { %v577_v28 = vadd.f32 %v573_v14, %v565_v19  ;;  %v597_v29 = vmul.f32 %v593_v63, %v505_v16  ;;  %v575_v30 = vadd.f32 %v571_v12, %v563_v17  ;;  %v595_v31 = vmul.f32 %v593_v63, %v503_v21  ;;  %v3722_v21 = vld [vmem:[#allocation4] sm:$0xff] }
 0x122   : > { %v578_v32 = vadd.f32 %v574_v15, %v566_v20  ;;  %v576_v33 = vadd.f32 %v572_v13, %v564_v18  ;;  %v598_v34 = vmul.f32 %v593_v63, %v506_v26  ;;  %v596_v36 = vmul.f32 %v593_v63, %v504_v27 }
 0x123   : > { %v589_v35 = vadd.f32 %v585_v24, %v577_v28  ;;  %v587_v37 = vadd.f32 %v583_v22, %v575_v30  ;;  %v708_v14 = vlaneseq }
 0x124   : > { %v590_v38 = vadd.f32 %v586_v25, %v578_v32  ;;  %v588_v39 = vadd.f32 %v584_v23, %v576_v33 }
 0x125   : > { %v601_v40 = vadd.f32 %v597_v29, %v589_v35  ;;  %v599_v41 = vadd.f32 %v595_v31, %v587_v37  ;;  %v3717_v17 = vshrl.u32 %v708_v14, 7 }
 0x126   : > { %v602_v43 = vadd.f32 %v598_v34, %v590_v38  ;;  %v600_v45 = vadd.f32 %v596_v36, %v588_v39  ;;  %v662_v39 = vld [vmem:[#allocation2 + $0x8] sm:$0xff] }
 0x127   : > { %v610_v42 = vsel %vm603_vm0, %v601_v40, 0.0  ;;  %v604_v44 = vsel %vm603_vm0, %v599_v41, 0.0  ;;  %v3720_v20 = vsub.s32 4, %v3717_v17  ;;  %988 = vmatprep.mubr.f32.mxu0 %v662_v39 }
 0x128   : > { %611 = vadd.xlane.f32.xlu1 %v610_v42  ;;  %605 = vadd.xlane.f32.xlu0 %v604_v44  ;;  %v613_v46 = vsel %vm603_vm0, %v602_v43, 0.0  ;;  %v607_v47 = vsel %vm603_vm0, %v600_v45, 0.0 }
 0x129   : > { %v794_v26 = vrot.slane %v3722_v21, %v3720_v20 }
 0x12c   : > { %614 = vadd.xlane.f32.xlu1 %v613_v46  ;;  %608 = vadd.xlane.f32.xlu0 %v607_v47 }
 0x1b5   : > { %v612_v48 = vpop.xlane.xlu1 %611  ;;  %v606_v50 = vpop.xlane.xlu0 %605 }
 0x1b6   : > { %v619_v49 = vmul.f32 0.0625, %v612_v48  ;;  %v617_v51 = vmul.f32 0.0625, %v606_v50 }
 0x1b8   : > { %v623_v52 = vsub.f32 %v601_v40, %v619_v49  ;;  %v621_v53 = vsub.f32 %v599_v41, %v617_v51  ;;  %v663_v40 = vld [vmem:[#allocation2 + $0x10] sm:$0xff]  ;;  %v3736_v41 = vsub.s32 0, %v3717_v17 }
 0x1b9   : > { %v615_v54 = vpop.xlane.xlu1 %614  ;;  %v609_v56 = vpop.xlane.xlu0 %608  ;;  %2659 = vmatprep.mubr.msk.f32.mxu1 %vm899_vm1, %v663_v40 }
 0x1ba   : > { %v620_v55 = vmul.f32 0.0625, %v615_v54  ;;  %v618_v57 = vmul.f32 0.0625, %v609_v56  ;;  %v625_v58 = vmul.f32 %v621_v53, %v621_v53  ;;  %v627_v62 = vmul.f32 %v623_v52, %v623_v52 }
 0x1bc   : > { %v624_v59 = vsub.f32 %v602_v43, %v620_v55  ;;  %v622_v60 = vsub.f32 %v600_v45, %v618_v57  ;;  %v629_v61 = vsel %vm603_vm0, %v625_v58, 0.0  ;;  %v635_v0 = vsel %vm603_vm0, %v627_v62, 0.0 }
 0x1bd   : > { %630 = vadd.xlane.f32.xlu0 %v629_v61  ;;  %v711_v43 = vrot.slane %v3722_v21, %v3736_v41 }
 0x1be   : > { %v626_v63 = vmul.f32 %v622_v60, %v622_v60  ;;  %v628_v2 = vmul.f32 %v624_v59, %v624_v59 }
 0x1c0   : > { %v632_v1 = vsel %vm603_vm0, %v626_v63, 0.0  ;;  %v638_v3 = vsel %vm603_vm0, %v628_v2, 0.0 }
 0x1c1   : > { %636 = vadd.xlane.f32.xlu0 %v635_v0  ;;  %633 = vadd.xlane.f32.xlu1 %v632_v1 }
 0x1c5   : > { %639 = vadd.xlane.f32.xlu1 %v638_v3 }
 0x24a   : > { %v631_v4 = vpop.xlane.xlu0 %630 }
 0x24b   : > { %v641_v5 = vmul.f32 0.0625, %v631_v4 }
 0x24d   : > { %v645_v6 = vadd.f32 1e-05, %v641_v5 }
 0x24e   : > { %v634_v7 = vpop.xlane.xlu1 %633  ;;  %v637_v8 = vpop.xlane.xlu0 %636 }
 0x24f   : > { %3007 = vrsqrt.f32 %v645_v6  ;;  %v642_v9 = vmul.f32 0.0625, %v634_v7  ;;  %v643_v10 = vmul.f32 0.0625, %v637_v8 }
 0x251   : > { %v646_v11 = vadd.f32 1e-05, %v642_v9  ;;  %v647_v12 = vadd.f32 1e-05, %v643_v10 }
 0x252   : > { %v640_v13 = vpop.xlane.xlu1 %639 }
 0x253   : > { %3009 = vrsqrt.f32 %v646_v11  ;;  %v644_v15 = vmul.f32 0.0625, %v640_v13 }
 0x254   : > { %3011 = vrsqrt.f32 %v647_v12 }
 0x255   : > { %v648_v16 = vadd.f32 1e-05, %v644_v15 }
 0x257   : > { %3013 = vrsqrt.f32 %v648_v16 }
 0x259   : > { %v3008_v18 = vpop.eup %3007 }
 0x25a   : > { %v653_v19 = vmul.f32 %v3008_v18, %v621_v53  ;;  %v3743_v53 = vsub.s32 5, %v3717_v17 }
 0x25c   : > { %v657_v22 = vmax.f32 %v653_v19, 0.0  ;;  %v819_v58 = vrot.slane %v3722_v21, %v3743_v53 }
 0x25d   : > { %v3010_v23 = vpop.eup %3009 }
 0x25e   : > { %v3012_v24 = vpop.eup %3011  ;;  %v654_v25 = vmul.f32 %v3010_v23, %v622_v60  ;;  %691 = vrot.lane.b32.xlu0 %v657_v22, %s3295_s17  ;;  %v795_v32 = vmul.f32 %v794_v26, %v657_v22  ;;  %v3750_v60 = vsub.s32 1, %v3717_v17 }
 0x25f   : > { %v655_v27 = vmul.f32 %v3012_v24, %v623_v52 }
 0x260   : > { %v658_v28 = vmax.f32 %v654_v25, 0.0  ;;  %v736_v4 = vrot.slane %v3722_v21, %v3750_v60 }
 0x261   : > { %v3014_v29 = vpop.eup %3013  ;;  %v659_v30 = vmax.f32 %v655_v27, 0.0 }
 0x262   : > { %v656_v31 = vmul.f32 %v3014_v29, %v624_v59  ;;  %693 = vrot.lane.b32.xlu1 %v658_v28, %s3295_s17  ;;  %799 = vrot.lane.b32.xlu0 %v657_v22, %s3296_s20  ;;  %v796_v33 = vmul.f32 %v794_v26, %v658_v28 }
 0x263   : > { %v797_v34 = vmul.f32 %v794_v26, %v659_v30 }
 0x264   : > { %v660_v35 = vmax.f32 %v656_v31, 0.0  ;;  %v2699_v36 = vpack.c.bf16 %v796_v33, %v795_v32  ;;  %v3768_v31 = vsub.s32 2, %v3717_v17 }
 0x266   : > { %716 = vrot.lane.b32.xlu0 %v657_v22, %s3297_s26  ;;  %2700 = vmatprep.subr.bf16.mxu0 %v2699_v36  ;;  %v798_v37 = vmul.f32 %v794_v26, %v660_v35  ;;  %v761_v39 = vrot.slane %v3722_v21, %v3768_v31 }
 0x267   : > { %695 = vrot.lane.b32.xlu1 %v659_v30, %s3295_s17 }
 0x268   : > { %v2703_v38 = vpack.c.bf16 %v798_v37, %v797_v34 }
 0x26a   : > { %803 = vrot.lane.b32.xlu0 %v659_v30, %s3296_s20 }
 0x26b   : > { %697 = vrot.lane.b32.xlu1 %v660_v35, %s3295_s17  ;;  %s3316_s17 = smov 111  }
 0x26e   : > { %720 = vrot.lane.b32.xlu0 %v659_v30, %s3297_s26 }
 0x26f   : > { %801 = vrot.lane.b32.xlu1 %v658_v28, %s3296_s20 }
 0x272   : > { %824 = vrot.lane.b32.xlu0 %v657_v22, %s3298_s23 }
 0x273   : > { %718 = vrot.lane.b32.xlu1 %v658_v28, %s3297_s26 }
 0x276   : > { %741 = vrot.lane.b32.xlu0 %v657_v22, %s3299_s15 }
 0x277   : > { %805 = vrot.lane.b32.xlu1 %v660_v35, %s3296_s20 }
 0x27a   : > { %828 = vrot.lane.b32.xlu0 %v659_v30, %s3298_s23 }
 0x27b   : > { %722 = vrot.lane.b32.xlu1 %v660_v35, %s3297_s26 }
 0x27e   : > { %745 = vrot.lane.b32.xlu0 %v659_v30, %s3299_s15 }
 0x27f   : > { %826 = vrot.lane.b32.xlu1 %v658_v28, %s3298_s23 }
 0x282   : > { %849 = vrot.lane.b32.xlu0 %v657_v22, %s3300_s25 }
 0x283   : > { %743 = vrot.lane.b32.xlu1 %v658_v28, %s3299_s15 }
 0x286   : > { %766 = vrot.lane.b32.xlu0 %v657_v22, %s3301_s12 }
 0x287   : > { %830 = vrot.lane.b32.xlu1 %v660_v35, %s3298_s23 }
 0x28a   : > { %853 = vrot.lane.b32.xlu0 %v659_v30, %s3300_s25 }
 0x28b   : > { %747 = vrot.lane.b32.xlu1 %v660_v35, %s3299_s15 }
 0x28e   : > { %770 = vrot.lane.b32.xlu0 %v659_v30, %s3301_s12 }
 0x28f   : > { %851 = vrot.lane.b32.xlu1 %v658_v28, %s3300_s25 }
 0x292   : > { %874 = vrot.lane.b32.xlu0 %v657_v22, %s3302_s28  ;;  %v3761_v22 = vsub.s32 6, %v3717_v17 }
 0x293   : > { %768 = vrot.lane.b32.xlu1 %v658_v28, %s3301_s12 }
 0x296   : > { %878 = vrot.lane.b32.xlu0 %v659_v30, %s3302_s28  ;;  %v844_v30 = vrot.slane %v3722_v21, %v3761_v22 }
 0x297   : > { %855 = vrot.lane.b32.xlu1 %v660_v35, %s3300_s25 }
 0x29b   : > { %772 = vrot.lane.b32.xlu1 %v660_v35, %s3301_s12 }
 0x29f   : > { %876 = vrot.lane.b32.xlu1 %v658_v28, %s3302_s28 }
 0x2a3   : > { %880 = vrot.lane.b32.xlu1 %v660_v35, %s3302_s28 }
 0x2d0   : > { %v692_v42 = vpop.permute.xlu0 %691 }
 0x2d1   : > { %v704_v44 = vsel %vm703_vm2, 0.0, %v692_v42 }
 0x2d2   : > { %v712_v48 = vmul.f32 %v711_v43, %v704_v44 }
 0x2d4   : > { %v694_v45 = vpop.permute.xlu1 %693  ;;  %v800_v46 = vpop.permute.xlu0 %799 }
 0x2d5   : > { %v705_v47 = vsel %vm703_vm2, 0.0, %v694_v45  ;;  %v812_v62 = vsel %vm811_vm3, %v800_v46, 0.0 }
 0x2d6   : > { %v713_v49 = vmul.f32 %v711_v43, %v705_v47  ;;  %v820_v3 = vmul.f32 %v819_v58, %v812_v62 }
 0x2d8   : > { %v717_v50 = vpop.permute.xlu0 %716  ;;  %v2701_v51 = vpack.c.bf16 %v713_v49, %v712_v48 }
 0x2d9   : > { %v696_v52 = vpop.permute.xlu1 %695  ;;  %v729_v6 = vsel %vm728_vm4, 0.0, %v717_v50 }
 0x2da   : > { %2702 = vmatpush3.bf16.msra.mxu0 %v2701_v51  ;;  %v706_v54 = vsel %vm703_vm2, 0.0, %v696_v52  ;;  %v737_v11 = vmul.f32 %v736_v4, %v729_v6 }
 0x2db   : > { %2704 = vmatprep.subr.bf16.mxu0 %v2703_v38  ;;  %v714_v59 = vmul.f32 %v711_v43, %v706_v54 }
 0x2dc   : > { %v804_v55 = vpop.permute.xlu0 %803 }
 0x2dd   : > { %v698_v56 = vpop.permute.xlu1 %697  ;;  %v814_v13 = vsel %vm811_vm3, %v804_v55, 0.0 }
 0x2de   : > { %v707_v57 = vsel %vm703_vm2, 0.0, %v698_v56  ;;  %v822_v19 = vmul.f32 %v819_v58, %v814_v13  ;;  %v3779_v56 = vsub.s32 7, %v3717_v17  ;;  %vm1628_vm2 = vcmask 449536  }
 0x2df   : > { %v715_v61 = vmul.f32 %v711_v43, %v707_v57 }
 0x2e0   : > { %v721_v63 = vpop.permute.xlu0 %720 }
 0x2e1   : > { %v2705_v0 = vpack.c.bf16 %v715_v61, %v714_v59  ;;  %v802_v1 = vpop.permute.xlu1 %801  ;;  %v731_v24 = vsel %vm728_vm4, 0.0, %v721_v63 }
 0x2e2   : > { %v813_v2 = vsel %vm811_vm3, %v802_v1, 0.0  ;;  %v739_v29 = vmul.f32 %v736_v4, %v731_v24  ;;  %v3786_v1 = vsub.s32 3, %v3717_v17 }
 0x2e3   : > { %v821_v5 = vmul.f32 %v819_v58, %v813_v2  ;;  %2706 = vmatpush3.bf16.msra.mxu0 %v2705_v0  ;;  %v869_v0 = vrot.slane %v3722_v21, %v3779_v56 }
 0x2e4   : > { %v825_v7 = vpop.permute.xlu0 %824 }
 0x2e5   : > { %v2707_v8 = vpack.c.bf16 %v821_v5, %v820_v3  ;;  %v719_v9 = vpop.permute.xlu1 %718  ;;  %v837_v33 = vsel %vm836_vm5, %v825_v7, 0.0 }
 0x2e6   : > { %v730_v10 = vsel %vm728_vm4, 0.0, %v719_v9  ;;  %v845_v38 = vmul.f32 %v844_v30, %v837_v33  ;;  %v786_v9 = vrot.slane %v3722_v21, %v3786_v1 }
 0x2e7   : > { %v738_v12 = vmul.f32 %v736_v4, %v730_v10  ;;  %2708 = vmatprep.subr.bf16.mxu0 %v2707_v8 }
 0x2e8   : > { %v742_v14 = vpop.permute.xlu0 %741 }
 0x2e9   : > { %v2709_v15 = vpack.c.bf16 %v738_v12, %v737_v11  ;;  %v806_v16 = vpop.permute.xlu1 %805  ;;  %v754_v42 = vsel %vm753_vm6, 0.0, %v742_v14 }
 0x2ea   : > { %v815_v18 = vsel %vm811_vm3, %v806_v16, 0.0  ;;  %v762_v47 = vmul.f32 %v761_v39, %v754_v42 }
 0x2eb   : > { %v823_v23 = vmul.f32 %v819_v58, %v815_v18  ;;  %2710 = vmatpush3.bf16.msra.mxu0 %v2709_v15 }
 0x2ec   : > { %v829_v25 = vpop.permute.xlu0 %828 }
 0x2ed   : > { %v2711_v26 = vpack.c.bf16 %v823_v23, %v822_v19  ;;  %v723_v27 = vpop.permute.xlu1 %722  ;;  %v839_v49 = vsel %vm836_vm5, %v829_v25, 0.0 }
 0x2ee   : > { %v732_v28 = vsel %vm728_vm4, 0.0, %v723_v27  ;;  %v847_v55 = vmul.f32 %v844_v30, %v839_v49  ;;  %vm2129_vm4 = vcmask 138240  }
 0x2ef   : > { %v740_v32 = vmul.f32 %v736_v4, %v732_v28  ;;  %2712 = vmatprep.subr.bf16.mxu0 %v2711_v26 }
 0x2f0   : > { %v746_v34 = vpop.permute.xlu0 %745 }
 0x2f1   : > { %v2713_v35 = vpack.c.bf16 %v740_v32, %v739_v29  ;;  %v827_v36 = vpop.permute.xlu1 %826  ;;  %v756_v58 = vsel %vm753_vm6, 0.0, %v746_v34  ;;  %v2534_v34 = vld [vmem:[#allocation4 + $0x8] ss:$0 sm:$0xff] }
 0x2f2   : > { %v838_v37 = vsel %vm836_vm5, %v827_v36, 0.0  ;;  %v764_v63 = vmul.f32 %v761_v39, %v756_v58  ;;  %v671_v58 = vld [vmem:[#allocation2 + $0x50] sm:$0xff] }
 0x2f3   : > { %v846_v40 = vmul.f32 %v844_v30, %v838_v37  ;;  %2714 = vmatpush3.bf16.msra.mxu0 %v2713_v35 }
 0x2f4   : > { %v850_v43 = vpop.permute.xlu0 %849 }
 0x2f5   : > { %v2715_v44 = vpack.c.bf16 %v846_v40, %v845_v38  ;;  %v744_v45 = vpop.permute.xlu1 %743  ;;  %v862_v4 = vsel %vm861_vm7, %v850_v43, 0.0  ;;  %v661_v43 = vld [vmem:[#allocation2] sm:$0xff] }
 0x2f6   : > { %v755_v46 = vsel %vm753_vm6, 0.0, %v744_v45  ;;  %v870_v8 = vmul.f32 %v869_v0, %v862_v4  ;;  %v665_v45 = vld [vmem:[#allocation2 + $0x20] sm:$0xff]  ;;  %v678_v4 = vld [vmem:[#allocation2 + $0x88] sm:$0xff] }
 0x2f7   : > { %v763_v48 = vmul.f32 %v761_v39, %v755_v46  ;;  %2716 = vmatprep.subr.bf16.mxu0 %v2715_v44 }
 0x2f8   : > { %v767_v52 = vpop.permute.xlu0 %766 }
 0x2f9   : > { %v2717_v50 = vpack.c.bf16 %v763_v48, %v762_v47  ;;  %v831_v51 = vpop.permute.xlu1 %830  ;;  %v779_v11 = vsel %vm778_vm8, 0.0, %v767_v52  ;;  %v668_v52 = vld [vmem:[#allocation2 + $0x38] sm:$0xff] }
 0x2fa   : > { %v840_v54 = vsel %vm836_vm5, %v831_v51, 0.0  ;;  %v787_v15 = vmul.f32 %v786_v9, %v779_v11  ;;  %v664_v51 = vld [vmem:[#allocation2 + $0x18] sm:$0xff]  ;;  %v682_v11 = vld [vmem:[#allocation2 + $0xa8] sm:$0xff]  ;;  %vm2231_vm5 = vcmask 924672  }
 0x2fb   : > { %v848_v57 = vmul.f32 %v844_v30, %v840_v54  ;;  %2718 = vmatpush3.bf16.msra.mxu0 %v2717_v50 }
 0x2fc   : > { %v854_v3 = vpop.permute.xlu0 %853 }
 0x2fd   : > { %v2719_v59 = vpack.c.bf16 %v848_v57, %v847_v55  ;;  %v748_v61 = vpop.permute.xlu1 %747  ;;  %v864_v18 = vsel %vm861_vm7, %v854_v3, 0.0  ;;  %v667_v55 = vld [vmem:[#allocation2 + $0x30] sm:$0xff]  ;;  %v666_v57 = vld [vmem:[#allocation2 + $0x28] sm:$0xff]  ;;  %v677_v3 = vld [vmem:[#allocation2 + $0x80] sm:$0xff] }
 0x2fe   : > { %v757_v62 = vsel %vm753_vm6, 0.0, %v748_v61  ;;  %v872_v25 = vmul.f32 %v869_v0, %v864_v18  ;;  %v670_v61 = vld [vmem:[#allocation2 + $0x48] sm:$0xff]  ;;  %vm2269_vm6 = vcmask 908288  }
 0x2ff   : > { %v765_v2 = vmul.f32 %v761_v39, %v757_v62  ;;  %2720 = vmatprep.subr.bf16.mxu0 %v2719_v59  ;;  %v669_v59 = vld [vmem:[#allocation2 + $0x40] sm:$0xff]  ;;  %v672_v62 = vld [vmem:[#allocation2 + $0x58] sm:$0xff] }
 0x300   : > { %v771_v12 = vpop.permute.xlu0 %770 }
 0x301   : > { %v2721_v5 = vpack.c.bf16 %v765_v2, %v764_v63  ;;  %v852_v6 = vpop.permute.xlu1 %851  ;;  %v781_v27 = vsel %vm778_vm8, 0.0, %v771_v12  ;;  %v674_v63 = vld [vmem:[#allocation2 + $0x68] sm:$0xff]  ;;  %v673_v2 = vld [vmem:[#allocation2 + $0x60] sm:$0xff] }
 0x302   : > { %v863_v7 = vsel %vm861_vm7, %v852_v6, 0.0  ;;  %v789_v32 = vmul.f32 %v786_v9, %v781_v27  ;;  %v676_v6 = vld [vmem:[#allocation2 + $0x78] sm:$0xff]  ;;  %v1137_v12 = vld [vmem:[#allocation6 + $0x18] sm:$0xff] }
 0x303   : > { %v871_v10 = vmul.f32 %v869_v0, %v863_v7  ;;  %2722 = vmatpush3.bf16.msra.mxu0 %v2721_v5  ;;  %v681_v5 = vld [vmem:[#allocation2 + $0xa0] sm:$0xff]  ;;  %v680_v7 = vld [vmem:[#allocation2 + $0x98] sm:$0xff] }
 0x304   : > { %v875_v21 = vpop.permute.xlu0 %874 }
 0x305   : > { %v2723_v17 = vpack.c.bf16 %v871_v10, %v870_v8  ;;  %v769_v13 = vpop.permute.xlu1 %768  ;;  %v887_v35 = vsel %vm886_vm9, %v875_v21, 0.0  ;;  %v684_v8 = vld [vmem:[#allocation2 + $0xb8] sm:$0xff]  ;;  %v683_v10 = vld [vmem:[#allocation2 + $0xb0] sm:$0xff] }
 0x306   : > { %v780_v14 = vsel %vm778_vm8, 0.0, %v769_v13  ;;  %v895_v40 = vmul.f32 %v2534_v34, %v887_v35 }
 0x307   : > { %v788_v16 = vmul.f32 %v786_v9, %v780_v14  ;;  %2724 = vmatprep.subr.bf16.mxu0 %v2723_v17  ;;  %v1136_v17 = vld [vmem:[#allocation6 + $0x10] sm:$0xff]  ;;  %v1134_v14 = vld [vmem:[#allocation6] sm:$0xff] }
 0x308   : > { %v879_v36 = vpop.permute.xlu0 %878  ;;  %v2739_v13 = vpack.c.bf16 %v1137_v12, %v1136_v17 }
 0x309   : > { %v2725_v19 = vpack.c.bf16 %v788_v16, %v787_v15  ;;  %v856_v23 = vpop.permute.xlu1 %855  ;;  %v889_v44 = vsel %vm886_vm9, %v879_v36, 0.0  ;;  %v1135_v15 = vld [vmem:[#allocation6 + $0x8] sm:$0xff] }
 0x30a   : > { %v865_v24 = vsel %vm861_vm7, %v856_v23, 0.0  ;;  %v897_v49 = vmul.f32 %v2534_v34, %v889_v44  ;;  %v2743_v16 = vpack.c.bf16 %v1135_v15, %v1134_v14  ;;  %vm2284_vm7 = vcmask 588800  }
 0x30b   : > { %v873_v26 = vmul.f32 %v869_v0, %v865_v24  ;;  %2726 = vmatpush3.bf16.msra.mxu0 %v2725_v19  ;;  %v675_v0 = vld [vmem:[#allocation2 + $0x70] sm:$0xff] }
 0x30d   : > { %v2727_v28 = vpack.c.bf16 %v873_v26, %v872_v25  ;;  %v773_v29 = vpop.permute.xlu1 %772 }
 0x30e   : > { %v782_v30 = vsel %vm778_vm8, 0.0, %v773_v29 }
 0x30f   : > { %v790_v33 = vmul.f32 %v786_v9, %v782_v30  ;;  %2728 = vmatprep.subr.bf16.mxu0 %v2727_v28  ;;  %v679_v9 = vld [vmem:[#allocation2 + $0x90] sm:$0xff] }
 0x311   : > { %v2729_v37 = vpack.c.bf16 %v790_v33, %v789_v32  ;;  %v877_v38 = vpop.permute.xlu1 %876 }
 0x312   : > { %v888_v39 = vsel %vm886_vm9, %v877_v38, 0.0  ;;  %v1139_v38 = vld [vmem:[#allocation6 + $0x28] sm:$0xff] }
 0x313   : > { %v896_v42 = vmul.f32 %v2534_v34, %v888_v39  ;;  %2730 = vmatpush3.bf16.msra.mxu0 %v2729_v37  ;;  %v1138_v37 = vld [vmem:[#allocation6 + $0x20] sm:$0xff] }
 0x315   : > { %v881_v46 = vpop.permute.xlu1 %880  ;;  %v2731_v47 = vpack.c.bf16 %v896_v42, %v895_v40 }
 0x316   : > { %v890_v48 = vsel %vm886_vm9, %v881_v46, 0.0  ;;  %989 = vmatmul.mubr.f32.vlgmr.msra.gmra.mrb[0].mxu0 %v661_v43 }
 0x317   : > { %v898_v50 = vmul.f32 %v2534_v34, %v890_v48  ;;  %2732 = vmatprep.subr.bf16.mxu1 %v2731_v47  ;;  %993 = vmatprep.mubr.f32.mxu0 %v665_v45  ;;  %v2747_v45 = vpack.c.bf16 %v1139_v38, %v1138_v37 }
 0x318   : > { %2734 = vmatpush3.bf16.msra.mxu1 %v2731_v47 }
 0x319   : > { %v2735_v54 = vpack.c.bf16 %v898_v50, %v897_v49 }
 0x31a   : > { %994 = vmatmul.mubr.f32.gmra.mrb[2].mxu0 %v664_v51 }
 0x31b   : > { %2736 = vmatprep.subr.bf16.mxu1 %v2735_v54  ;;  %998 = vmatprep.mubr.f32.mxu0 %v668_v52 }
 0x31c   : > { %2738 = vmatpush3.bf16.msra.mxu1 %v2735_v54 }
 0x31d   : > { %2740 = vmatprep.subr.bf16.mxu1 %v2739_v13 }
 0x31e   : > { %999 = vmatmul.mubr.f32.gmra.mrb[4].mxu0 %v667_v55  ;;  %v1140_v55 = vld [vmem:[#allocation6 + $0x30] sm:$0xff] }
 0x31f   : > { %2660 = vmatmul.mubr.msk.f32.vlgmr.msra.gmra.mrb[0].mxu1 %vm899_vm1, %v666_v57  ;;  %1003 = vmatprep.mubr.f32.mxu0 %v671_v58  ;;  %v1141_v57 = vld [vmem:[#allocation6 + $0x38] sm:$0xff] }
 0x320   : > { %2662 = vmatprep.mubr.msk.f32.mxu1 %vm899_vm1, %v669_v59  ;;  %2742 = vmatpush3.bf16.msra.mxu1 %v2739_v13 }
 0x321   : > { %2744 = vmatprep.subr.bf16.mxu1 %v2743_v16 }
 0x322   : > { %1004 = vmatmul.mubr.f32.gmra.mrb[6].mxu0 %v670_v61 }
 0x323   : > { %2663 = vmatmul.mubr.msk.f32.gmra.mrb[2].mxu1 %vm899_vm1, %v672_v62  ;;  %1008 = vmatprep.mubr.f32.mxu0 %v674_v63  ;;  %v2751_v63 = vpack.c.bf16 %v1141_v57, %v1140_v55  ;;  %v1754_v55 = vld [vmem:[#allocation10 + $0xa0] sm:$0xff]  ;;  %v1756_v57 = vld [vmem:[#allocation10 + $0xb0] sm:$0xff] }
 0x324   : > { %2665 = vmatprep.mubr.msk.f32.mxu1 %vm899_vm1, %v675_v0 }
 0x326   : > { %1009 = vmatmul.mubr.f32.gmra.mrb[8].mxu0 %v673_v2 }
 0x327   : > { %1013 = vmatprep.mubr.f32.mxu0 %v677_v3  ;;  %2666 = vmatmul.mubr.msk.f32.gmra.mrb[4].mxu1 %vm899_vm1, %v678_v4 }
 0x328   : > { %2668 = vmatprep.mubr.msk.f32.mxu1 %vm899_vm1, %v681_v5 }
 0x32a   : > { %1014 = vmatmul.mubr.f32.gmra.mrb[10].mxu0 %v676_v6 }
 0x32b   : > { %1018 = vmatprep.mubr.f32.mxu0 %v680_v7  ;;  %2669 = vmatmul.mubr.msk.f32.gmra.mrb[6].mxu1 %vm899_vm1, %v684_v8  ;;  %vm1613_vm1 = vcmask 457728  }
 0x32e   : > { %1019 = vmatmul.mubr.f32.gmra.mrb[12].mxu0 %v679_v9 }
 0x32f   : > { %1023 = vmatprep.mubr.f32.mxu0 %v683_v10 }
 0x332   : > { %1024 = vmatmul.mubr.f32.gmra.mrb[14].mxu0 %v682_v11 }
 0x3e9   : > { %v2599_v18 = vpop.f32.mrb[0].mxu0 }
 0x3ea   : > { %v2600_v19 = vpop.f32.mrb[1].mxu0 }
 0x3eb   : > { %v2601_v23 = vadd.f32 %v2600_v19, %v2599_v18 }
 0x3ed   : > { %v2602_v24 = vpop.f32.mrb[2].mxu0 }
 0x3ee   : > { %v2603_v25 = vpop.f32.mrb[3].mxu0 }
 0x3ef   : > { %v2604_v21 = vadd.f32 %v2603_v25, %v2602_v24 }
 0x3f1   : > { %v2605_v26 = vpop.f32.mrb[4].mxu0 }
 0x3f2   : > { %v2606_v27 = vpop.f32.mrb[5].mxu0  ;;  %v2661_v28 = vpop.f32.mrb[0].mxu1 }
 0x3f3   : > { %v2607_v29 = vadd.f32 %v2606_v27, %v2605_v26  ;;  %v1101_v30 = vadd.f32 %v2661_v28, %v2604_v21  ;;  %v1095_v32 = vpop.f32.mrb[1].mxu1 }
 0x3f4   : > { %v1096_v33 = vadd.f32 %v2601_v23, %v1095_v32  ;;  %v3303_v32 = vmov 0.0|0.0  }
 0x3f5   : > { %v2608_v34 = vpop.f32.mrb[6].mxu0  ;;  %2755 = vmatprep.subr.bf16.mxu0 %v3303_v32 }
 0x3f6   : > { %v2609_v35 = vpop.f32.mrb[7].mxu0  ;;  %v2664_v36 = vpop.f32.mrb[2].mxu1 }
 0x3f7   : > { %v2610_v39 = vadd.f32 %v2609_v35, %v2608_v34  ;;  %v1105_v40 = vpop.f32.mrb[3].mxu1  ;;  %v3822_v34 = vld [vmem:[#allocation9] sm:$0xff] }
 0x3f8   : > { %v1106_v42 = vadd.f32 %v2607_v29, %v1105_v40  ;;  %v1574_v38 = vrot.slane %v3822_v34, %v3720_v20 }
 0x3f9   : > { %v1111_v43 = vadd.f32 %v2664_v36, %v2610_v39  ;;  %v2611_v44 = vpop.f32.mrb[8].mxu0 }
 0x3fa   : > { %2675 = vmatprep.mubr.msk.f32.mxu1 %vm603_vm0, %v1106_v42  ;;  %v2612_v46 = vpop.f32.mrb[9].mxu0  ;;  %v2667_v47 = vpop.f32.mrb[4].mxu1 }
 0x3fb   : > { %2676 = vmatmul.mubr.msk.f32.vlgmr.msra.gmra.mrb[8].mxu1 %vm603_vm0, %v1111_v43  ;;  %v2613_v48 = vadd.f32 %v2612_v46, %v2611_v44  ;;  %v1115_v49 = vpop.f32.mrb[5].mxu1  ;;  %v1501_v44 = vld [vmem:[#allocation7 + $0x8] sm:$0xff] }
 0x3fc   : > { %2682 = vmatprep.mubr.msk.f32.mxu1 %vm603_vm0, %v1096_v33  ;;  %2746 = vmatpush3.bf16.msra.mxu1 %v2743_v16  ;;  %v1753_v46 = vld [vmem:[#allocation10 + $0x98] sm:$0xff] }
 0x3fd   : > { %v2614_v50 = vpop.f32.mrb[10].mxu0  ;;  %v1116_v51 = vadd.f32 %v2613_v48, %v1115_v49  ;;  %2748 = vmatprep.subr.bf16.mxu1 %v2747_v45  ;;  %2552 = vmatprep.mubr.msk.f32.mxu0 %vm603_vm0, %v1501_v44  ;;  %v1752_v49 = vld [vmem:[#allocation10 + $0x90] sm:$0xff] }
 0x3fe   : > { %v2615_v52 = vpop.f32.mrb[11].mxu0  ;;  %v2670_v54 = vpop.f32.mrb[6].mxu1 }
 0x3ff   : > { %v2616_v58 = vadd.f32 %v2615_v52, %v2614_v50  ;;  %v1125_v59 = vpop.f32.mrb[7].mxu1  ;;  %v1755_v50 = vld [vmem:[#allocation10 + $0xa8] sm:$0xff] }
 0x401   : > { %v1121_v61 = vadd.f32 %v2667_v47, %v2616_v58  ;;  %v2617_v62 = vpop.f32.mrb[12].mxu0  ;;  %v1750_v47 = vld [vmem:[#allocation10 + $0x80] sm:$0xff]  ;;  %v1759_v58 = vld [vmem:[#allocation10 + $0xc8] sm:$0xff] }
 0x402   : > { %v2618_v0 = vpop.f32.mrb[13].mxu0  ;;  %v2784_v52 = vpack.c.bf16 %v1752_v49, %v1750_v47 }
 0x403   : > { %2683 = vmatmul.mubr.msk.f32.vlgmr.msra.gmra.mrb[8].mxu1 %vm603_vm0, %v1101_v30  ;;  %v2619_v2 = vadd.f32 %v2618_v0, %v2617_v62  ;;  %v1760_v0 = vld [vmem:[#allocation10 + $0xd0] sm:$0xff] }
 0x404   : > { %2750 = vmatpush3.bf16.msra.mxu1 %v2747_v45  ;;  %2689 = vmatprep.mubr.msk.f32.mxu1 %vm603_vm0, %v1116_v51  ;;  %v1751_v45 = vld [vmem:[#allocation10 + $0x88] sm:$0xff]  ;;  %v1757_v51 = vld [vmem:[#allocation10 + $0xb8] sm:$0xff] }
 0x405   : > { %v2620_v3 = vpop.f32.mrb[14].mxu0  ;;  %v1126_v4 = vadd.f32 %v2619_v2, %v1125_v59  ;;  %2752 = vmatprep.subr.bf16.mxu1 %v2751_v63  ;;  %v2782_v48 = vpack.c.bf16 %v1753_v46, %v1751_v45  ;;  %v1761_v59 = vld [vmem:[#allocation10 + $0xd8] sm:$0xff] }
 0x406   : > { %v2621_v5 = vpop.f32.mrb[15].mxu0  ;;  %v2790_v62 = vpack.c.bf16 %v1761_v59, %v1759_v58 }
 0x407   : > { %v2622_v6 = vadd.f32 %v2621_v5, %v2620_v3 }
 0x409   : > { %v1131_v7 = vadd.f32 %v2670_v54, %v2622_v6  ;;  %v2786_v54 = vpack.c.bf16 %v1757_v51, %v1755_v50 }
 0x40b   : > { %2690 = vmatmul.mubr.msk.f32.vlgmr.msra.gmra.mrb[8].mxu1 %vm603_vm0, %v1121_v61  ;;  %v2788_v61 = vpack.c.bf16 %v1756_v57, %v1754_v55  ;;  %v1604_v55 = vrot.slane %v3822_v34, %v3761_v22 }
 0x40c   : > { %2754 = vmatpush3.bf16.msra.mxu1 %v2751_v63  ;;  %2696 = vmatprep.mubr.msk.f32.mxu1 %vm603_vm0, %v1126_v4  ;;  %v1758_v63 = vld [vmem:[#allocation10 + $0xc0] sm:$0xff]  ;;  %v1524_v4 = vrot.slane %v3822_v34, %v3736_v41 }
 0x40d   : > { %2783 = vmatprep.subr.bf16.mxu1 %v2782_v48  ;;  %v2792_v2 = vpack.c.bf16 %v1760_v0, %v1758_v63  ;;  %v1589_v48 = vrot.slane %v3822_v34, %v3743_v53 }
 0x413   : > { %2697 = vmatmul.mubr.msk.f32.vlgmr.msra.gmra.mrb[8].mxu1 %vm603_vm0, %v1131_v7 }
 0x414   : > { %2785 = vmatpush1.bf16.msra.mxu1 %v2784_v52 }
 0x415   : > { %2787 = vmatprep.subr.bf16.mxu1 %v2786_v54 }
 0x418   : > { %2789 = vmatpush1.bf16.msra.mxu1 %v2788_v61 }
 0x419   : > { %2791 = vmatprep.subr.bf16.mxu1 %v2790_v62 }
 0x41c   : > { %2793 = vmatpush1.bf16.msra.mxu1 %v2792_v2  ;;  %v1619_v2 = vrot.slane %v3822_v34, %v3779_v56 }
 0x4e6   : > { %v2698_v8 = vpop.f32.mrb[8].mxu1 }
 0x4e7   : > { %v1459_v9 = vpop.f32.mrb[9].mxu1  ;;  %v1474_v10 = vsel %vm1470_vm10, %v2698_v8, 0.0 }
 0x4e8   : > { %1475 = vadd.xlane.f32.xlu1 %v1474_v10  ;;  %v1471_v11 = vsel %vm1470_vm10, %v1459_v9, 0.0 }
 0x4e9   : > { %1472 = vadd.xlane.f32.xlu0 %v1471_v11 }
 0x575   : > { %v1476_v17 = vpop.xlane.xlu1 %1475 }
 0x576   : > { %v1479_v12 = vmul.f32 0.015625, %v1476_v17  ;;  %v1473_v13 = vpop.xlane.xlu0 %1472 }
 0x577   : > { %v1478_v14 = vmul.f32 0.015625, %v1473_v13 }
 0x578   : > { %v1481_v15 = vsub.f32 %v2698_v8, %v1479_v12  ;;  %v1539_v12 = vrot.slane %v3822_v34, %v3750_v60 }
 0x579   : > { %v1480_v16 = vsub.f32 %v1459_v9, %v1478_v14 }
 0x57a   : > { %v1483_v23 = vmul.f32 %v1481_v15, %v1481_v15 }
 0x57b   : > { %v1482_v18 = vmul.f32 %v1480_v16, %v1480_v16 }
 0x57c   : > { %v1487_v24 = vsel %vm1470_vm10, %v1483_v23, 0.0 }
 0x57d   : > { %v1484_v19 = vsel %vm1470_vm10, %v1482_v18, 0.0  ;;  %v1554_v18 = vrot.slane %v3822_v34, %v3768_v31 }
 0x57e   : > { %1485 = vadd.xlane.f32.xlu0 %v1484_v19 }
 0x582   : > { %1488 = vadd.xlane.f32.xlu0 %v1487_v24 }
 0x60b   : > { %v1486_v25 = vpop.xlane.xlu0 %1485 }
 0x60c   : > { %v1490_v21 = vmul.f32 0.015625, %v1486_v25 }
 0x60e   : > { %v1492_v26 = vadd.f32 1e-05, %v1490_v21 }
 0x60f   : > { %v1489_v27 = vpop.xlane.xlu0 %1488 }
 0x610   : > { %3015 = vrsqrt.f32 %v1492_v26  ;;  %v1491_v28 = vmul.f32 0.015625, %v1489_v27 }
 0x612   : > { %v1493_v29 = vadd.f32 1e-05, %v1491_v28  ;;  %v1568_v28 = vrot.slane %v3822_v34, %v3786_v1 }
 0x614   : > { %3017 = vrsqrt.f32 %v1493_v29 }
 0x61a   : > { %v3016_v30 = vpop.eup %3015 }
 0x61b   : > { %v1496_v33 = vmul.f32 %v3016_v30, %v1480_v16 }
 0x61d   : > { %v1498_v35 = vmax.f32 %v1496_v33, 0.0 }
 0x61e   : > { %v3018_v36 = vpop.eup %3017 }
 0x61f   : > { %v1497_v37 = vmul.f32 %v3018_v36, %v1481_v15  ;;  %1512 = vrot.lane.b32.xlu0 %v1498_v35, %s3304_s19  ;;  %v3826_v40 = vmul.f32 %v1574_v38, %v1498_v35 }
 0x621   : > { %v1499_v39 = vmax.f32 %v1497_v37, 0.0 }
 0x623   : > { %1542 = vrot.lane.b32.xlu0 %v1498_v35, %s3305_s18  ;;  %1514 = vrot.lane.b32.xlu1 %v1499_v39, %s3304_s19  ;;  %v3828_v42 = vmul.f32 %v1574_v38, %v1499_v39 }
 0x625   : > { %v2768_v43 = vpack.c.bf16 %v3828_v42, %v3826_v40 }
 0x627   : > { %1557 = vrot.lane.b32.xlu0 %v1498_v35, %s3301_s12  ;;  %1529 = vrot.lane.b32.xlu1 %v1499_v39, %s3306_s14 }
 0x62b   : > { %1577 = vrot.lane.b32.xlu0 %v1498_v35, %s3296_s20  ;;  %1527 = vrot.lane.b32.xlu1 %v1498_v35, %s3306_s14 }
 0x62f   : > { %1592 = vrot.lane.b32.xlu0 %v1498_v35, %s3307_s21  ;;  %1544 = vrot.lane.b32.xlu1 %v1499_v39, %s3305_s18 }
 0x633   : > { %1607 = vrot.lane.b32.xlu0 %v1498_v35, %s3308_s24  ;;  %1559 = vrot.lane.b32.xlu1 %v1499_v39, %s3301_s12 }
 0x637   : > { %1622 = vrot.lane.b32.xlu0 %v1498_v35, %s3309_s27  ;;  %1579 = vrot.lane.b32.xlu1 %v1499_v39, %s3296_s20 }
 0x63b   : > { %1594 = vrot.lane.b32.xlu1 %v1499_v39, %s3307_s21 }
 0x63f   : > { %1609 = vrot.lane.b32.xlu1 %v1499_v39, %s3308_s24 }
 0x643   : > { %1624 = vrot.lane.b32.xlu1 %v1499_v39, %s3309_s27 }
 0x691   : > { %v1513_v3 = vpop.permute.xlu0 %1512 }
 0x692   : > { %v1519_v5 = vsel %vm1518_vm11, 0.0, %v1513_v3 }
 0x693   : > { %v1525_v8 = vmul.f32 %v1524_v4, %v1519_v5 }
 0x695   : > { %v1515_v6 = vpop.permute.xlu1 %1514  ;;  %v1543_v10 = vpop.permute.xlu0 %1542 }
 0x696   : > { %v1520_v7 = vsel %vm1518_vm11, 0.0, %v1515_v6  ;;  %v1549_v24 = vsel %vm1548_vm13, 0.0, %v1543_v10 }
 0x697   : > { %v1526_v9 = vmul.f32 %v1524_v4, %v1520_v7  ;;  %v1555_v27 = vmul.f32 %v1554_v18, %v1549_v24  ;;  %v2551_v7 = vld [vmem:[#allocation9 + $0x8] ss:$0 sm:$0xff]  ;;  %v1762_v24 = vld [vmem:[#allocation10 + $0xe0] sm:$0xff] }
 0x699   : > { %v2756_v11 = vpack.c.bf16 %v1526_v9, %v1525_v8  ;;  %v1530_v17 = vpop.permute.xlu1 %1529  ;;  %v1558_v14 = vpop.permute.xlu0 %1557 }
 0x69a   : > { %v1535_v13 = vsel %vm1533_vm12, 0.0, %v1530_v17  ;;  %v1563_v33 = vsel %vm778_vm8, 0.0, %v1558_v14  ;;  %v1500_v17 = vld [vmem:[#allocation7] sm:$0xff]  ;;  %v1505_v14 = vld [vmem:[#allocation7 + $0x28] sm:$0xff] }
 0x69b   : > { %2757 = vmatpush1.bf16.msra.mxu0 %v2756_v11  ;;  %v1541_v19 = vmul.f32 %v1539_v12, %v1535_v13  ;;  %v1569_v38 = vmul.f32 %v1568_v28, %v1563_v33  ;;  %v1502_v13 = vld [vmem:[#allocation7 + $0x10] sm:$0xff]  ;;  %v1736_v33 = vld [vmem:[#allocation10 + $0x10] sm:$0xff] }
 0x69c   : > { %2758 = vmatprep.subr.bf16.mxu0 %v3303_v32 }
 0x69d   : > { %v1528_v15 = vpop.permute.xlu1 %1527  ;;  %v1578_v29 = vpop.permute.xlu0 %1577 }
 0x69e   : > { %v1534_v16 = vsel %vm1533_vm12, 0.0, %v1528_v15  ;;  %v1584_v49 = vsel %vm1583_vm14, %v1578_v29, 0.0  ;;  %v1504_v15 = vld [vmem:[#allocation7 + $0x20] sm:$0xff]  ;;  %v3310_v29 = vmov 0.0  }
 0x69f   : > { %v1540_v23 = vmul.f32 %v1539_v12, %v1534_v16  ;;  %v1590_v54 = vmul.f32 %v1589_v48, %v1584_v49  ;;  %v1503_v12 = vld [vmem:[#allocation7 + $0x18] sm:$0xff]  ;;  %1865 = vmatprep.mubr.f32.mxu1 %v3310_v29  ;;  %v1745_v49 = vld [vmem:[#allocation10 + $0x58] sm:$0xff] }
 0x6a0   : > { %v1507_v16 = vld [vmem:[#allocation7 + $0x38] sm:$0xff] }
 0x6a1   : > { %v2759_v25 = vpack.c.bf16 %v1541_v19, %v1540_v23  ;;  %v1545_v21 = vpop.permute.xlu1 %1544  ;;  %v1593_v44 = vpop.permute.xlu0 %1592  ;;  %v1765_v19 = vld [vmem:[#allocation10 + $0xf8] sm:$0xff] }
 0x6a2   : > { %v1550_v26 = vsel %vm1548_vm13, 0.0, %v1545_v21  ;;  %v1599_v58 = vsel %vm1598_vm15, %v1593_v44, 0.0 }
 0x6a3   : > { %v1556_v30 = vmul.f32 %v1554_v18, %v1550_v26  ;;  %2760 = vmatpush1.bf16.msra.mxu0 %v2759_v25  ;;  %v1605_v0 = vmul.f32 %v1604_v55, %v1599_v58  ;;  %v1506_v18 = vld [vmem:[#allocation7 + $0x30] sm:$0xff]  ;;  %v1764_v25 = vld [vmem:[#allocation10 + $0xf0] sm:$0xff]  ;;  %v1735_v26 = vld [vmem:[#allocation10 + $0x8] sm:$0xff] }
 0x6a4   : > { %2761 = vmatprep.subr.bf16.mxu0 %v3303_v32  ;;  %v2796_v21 = vpack.c.bf16 %v1764_v25, %v1762_v24  ;;  %v1749_v58 = vld [vmem:[#allocation10 + $0x78] sm:$0xff]  ;;  %v1778_v25 = vld [vmem:[#allocation10 + $0x160] sm:$0xff] }
 0x6a5   : > { %v2762_v35 = vpack.c.bf16 %v1556_v30, %v1555_v27  ;;  %v1560_v36 = vpop.permute.xlu1 %1559  ;;  %v1608_v57 = vpop.permute.xlu0 %1607  ;;  %v1737_v27 = vld [vmem:[#allocation10 + $0x18] sm:$0xff]  ;;  %v1734_v30 = vld [vmem:[#allocation10] sm:$0xff] }
 0x6a6   : > { %v1564_v37 = vsel %vm778_vm8, 0.0, %v1560_v36  ;;  %v1614_v3 = vsel %vm1613_vm1, %v1608_v57, 0.0  ;;  %v1739_v36 = vld [vmem:[#allocation10 + $0x28] sm:$0xff] }
 0x6a7   : > { %v1570_v39 = vmul.f32 %v1568_v28, %v1564_v37  ;;  %2763 = vmatpush1.bf16.msra.mxu0 %v2762_v35  ;;  %v1620_v6 = vmul.f32 %v1619_v2, %v1614_v3  ;;  %v2798_v28 = vpack.c.bf16 %v1737_v27, %v1735_v26  ;;  %v1741_v37 = vld [vmem:[#allocation10 + $0x38] sm:$0xff]  ;;  %v1747_v57 = vld [vmem:[#allocation10 + $0x68] sm:$0xff] }
 0x6a8   : > { %2764 = vmatprep.subr.bf16.mxu0 %v3303_v32  ;;  %v2802_v44 = vpack.c.bf16 %v1741_v37, %v1739_v36  ;;  %v1767_v3 = vld [vmem:[#allocation10 + $0x108] sm:$0xff]  ;;  %v1785_v27 = vld [vmem:[#allocation10 + $0x198] sm:$0xff] }
 0x6a9   : > { %v2765_v45 = vpack.c.bf16 %v1570_v39, %v1569_v38  ;;  %v1580_v46 = vpop.permute.xlu1 %1579  ;;  %v1623_v4 = vpop.permute.xlu0 %1622  ;;  %v2800_v39 = vpack.c.bf16 %v1736_v33, %v1734_v30  ;;  %v1783_v26 = vld [vmem:[#allocation10 + $0x188] sm:$0xff]  ;;  %v1782_v33 = vld [vmem:[#allocation10 + $0x180] sm:$0xff]  ;;  %v1789_v37 = vld [vmem:[#allocation10 + $0x1b8] sm:$0xff] }
 0x6aa   : > { %v1585_v47 = vsel %vm1583_vm14, %v1580_v46, 0.0  ;;  %v1629_v8 = vsel %vm1628_vm2, %v1623_v4, 0.0  ;;  %v1740_v46 = vld [vmem:[#allocation10 + $0x30] sm:$0xff]  ;;  %v1769_v4 = vld [vmem:[#allocation10 + $0x118] sm:$0xff]  ;;  %v2830_v30 = vpack.c.bf16 %v1785_v27, %v1783_v26  ;;  %v1787_v36 = vld [vmem:[#allocation10 + $0x1a8] sm:$0xff] }
 0x6ab   : > { %2766 = vmatpush1.bf16.msra.mxu0 %v2765_v45  ;;  %v1591_v50 = vmul.f32 %v1589_v48, %v1585_v47  ;;  %v1635_v11 = vmul.f32 %v2551_v7, %v1629_v8  ;;  %v1738_v45 = vld [vmem:[#allocation10 + $0x20] sm:$0xff]  ;;  %v1743_v48 = vld [vmem:[#allocation10 + $0x48] sm:$0xff] }
 0x6ac   : > { %2767 = vmatprep.subr.bf16.mxu0 %v3303_v32  ;;  %v1771_v8 = vld [vmem:[#allocation10 + $0x128] sm:$0xff] }
 0x6ad   : > { %v1595_v51 = vpop.permute.xlu1 %1594  ;;  %v2771_v59 = vpack.c.bf16 %v1591_v50, %v1590_v54  ;;  %v1742_v54 = vld [vmem:[#allocation10 + $0x40] sm:$0xff] }
 0x6ae   : > { %v1600_v52 = vsel %vm1598_vm15, %v1595_v51, 0.0  ;;  %v2804_v51 = vpack.c.bf16 %v1740_v46, %v1738_v45  ;;  %v1788_v45 = vld [vmem:[#allocation10 + $0x1b0] sm:$0xff]  ;;  %v1791_v46 = vld [vmem:[#allocation10 + $0x1c8] sm:$0xff] }
 0x6af   : > { %2769 = vmatpush1.bf16.msra.mxu0 %v2768_v43  ;;  %v1606_v61 = vmul.f32 %v1604_v55, %v1600_v52  ;;  %v2806_v52 = vpack.c.bf16 %v1745_v49, %v1743_v48  ;;  %v1744_v55 = vld [vmem:[#allocation10 + $0x50] sm:$0xff] }
 0x6b0   : > { %2770 = vmatprep.subr.bf16.mxu0 %v3303_v32 }
 0x6b1   : > { %v1610_v62 = vpop.permute.xlu1 %1609  ;;  %v2774_v40 = vpack.c.bf16 %v1606_v61, %v1605_v0  ;;  %v1746_v0 = vld [vmem:[#allocation10 + $0x60] sm:$0xff] }
 0x6b2   : > { %v1615_v63 = vsel %vm1613_vm1, %v1610_v62, 0.0  ;;  %v2808_v62 = vpack.c.bf16 %v1744_v55, %v1742_v54  ;;  %v1797_v54 = vld [vmem:[#allocation10 + $0x1f8] sm:$0xff] }
 0x6b3   : > { %2772 = vmatpush1.bf16.msra.mxu0 %v2771_v59  ;;  %v1621_v42 = vmul.f32 %v1619_v2, %v1615_v63  ;;  %v2810_v63 = vpack.c.bf16 %v1749_v58, %v1747_v57  ;;  %v1748_v2 = vld [vmem:[#allocation10 + $0x70] sm:$0xff]  ;;  %v1794_v58 = vld [vmem:[#allocation10 + $0x1e0] sm:$0xff] }
 0x6b4   : > { %2773 = vmatprep.subr.bf16.mxu0 %v3303_v32 }
 0x6b5   : > { %v1625_v43 = vpop.permute.xlu1 %1624  ;;  %v2777_v9 = vpack.c.bf16 %v1621_v42, %v1620_v6  ;;  %v1766_v6 = vld [vmem:[#allocation10 + $0x100] sm:$0xff] }
 0x6b6   : > { %v1630_v5 = vsel %vm1628_vm2, %v1625_v43, 0.0  ;;  %v2812_v43 = vpack.c.bf16 %v1748_v2, %v1746_v0 }
 0x6b7   : > { %2775 = vmatpush1.bf16.msra.mxu0 %v2774_v40  ;;  %v1636_v10 = vmul.f32 %v2551_v7, %v1630_v5  ;;  %v2814_v5 = vpack.c.bf16 %v1769_v4, %v1767_v3  ;;  %v1768_v7 = vld [vmem:[#allocation10 + $0x110] sm:$0xff] }
 0x6b8   : > { %2776 = vmatprep.subr.bf16.mxu0 %v3303_v32 }
 0x6b9   : > { %v2780_v34 = vpack.c.bf16 %v1636_v10, %v1635_v11  ;;  %v2816_v10 = vpack.c.bf16 %v1768_v7, %v1766_v6 }
 0x6bb   : > { %2778 = vmatpush1.bf16.msra.mxu0 %v2777_v9  ;;  %v1773_v9 = vld [vmem:[#allocation10 + $0x138] sm:$0xff] }
 0x6bc   : > { %2779 = vmatprep.subr.bf16.mxu0 %v3303_v32  ;;  %v1763_v32 = vld [vmem:[#allocation10 + $0xe8] sm:$0xff]  ;;  %v2818_v11 = vpack.c.bf16 %v1773_v9, %v1771_v8 }
 0x6bd   : > { %v2794_v23 = vpack.c.bf16 %v1765_v19, %v1763_v32  ;;  %v1779_v32 = vld [vmem:[#allocation10 + $0x168] sm:$0xff]  ;;  %v1781_v19 = vld [vmem:[#allocation10 + $0x178] sm:$0xff] }
 0x6be   : > { %v2826_v24 = vpack.c.bf16 %v1781_v19, %v1779_v32 }
 0x6bf   : > { %2781 = vmatpush1.bf16.msra.mxu0 %v2780_v34  ;;  %2795 = vmatprep.subr.bf16.mxu1 %v2794_v23  ;;  %v1770_v34 = vld [vmem:[#allocation10 + $0x120] sm:$0xff] }
 0x6c0   : > { %2797 = vmatpush1.bf16.msra.mxu1 %v2796_v21  ;;  %v1780_v21 = vld [vmem:[#allocation10 + $0x170] sm:$0xff] }
 0x6c1   : > { %2799 = vmatprep.subr.bf16.mxu1 %v2798_v28  ;;  %v2828_v28 = vpack.c.bf16 %v1780_v21, %v1778_v25 }
 0x6c2   : > { %1714 = vmatmul.mubr.f32.vlgmr.msra.gmra.mrb[16].mxu0 %v1500_v17  ;;  %v1772_v17 = vld [vmem:[#allocation10 + $0x130] sm:$0xff] }
 0x6c3   : > { %2553 = vmatprep.mubr.msk.f32.mxu0 %vm603_vm0, %v1503_v12  ;;  %v1775_v12 = vld [vmem:[#allocation10 + $0x148] sm:$0xff] }
 0x6c6   : > { %1719 = vmatmul.mubr.f32.gmra.mrb[18].mxu0 %v1502_v13  ;;  %v1777_v13 = vld [vmem:[#allocation10 + $0x158] sm:$0xff] }
 0x6c7   : > { %2554 = vmatprep.mubr.msk.f32.mxu0 %vm603_vm0, %v1505_v14  ;;  %v2820_v14 = vpack.c.bf16 %v1772_v17, %v1770_v34 }
 0x6ca   : > { %1724 = vmatmul.mubr.f32.gmra.mrb[20].mxu0 %v1504_v15  ;;  %v2822_v15 = vpack.c.bf16 %v1777_v13, %v1775_v12 }
 0x6cb   : > { %2555 = vmatprep.mubr.msk.f32.mxu0 %vm603_vm0, %v1507_v16  ;;  %v1774_v16 = vld [vmem:[#allocation10 + $0x140] sm:$0xff] }
 0x6ce   : > { %1729 = vmatmul.mubr.f32.gmra.mrb[22].mxu0 %v1506_v18  ;;  %v1776_v18 = vld [vmem:[#allocation10 + $0x150] sm:$0xff] }
 0x6cf   : > { %2355 = vmatprep.mubr.f32.mxu0 %v3310_v29  ;;  %v2824_v23 = vpack.c.bf16 %v1776_v18, %v1774_v16 }
 0x795   : > { %v1715_v35 = vpop.f32.mrb[16].mxu0 }
 0x796   : > { %v1717_v38 = vpop.f32.mrb[17].mxu0 }
 0x799   : > { %v1720_v47 = vpop.f32.mrb[18].mxu0 }
 0x79a   : > { %v1722_v50 = vpop.f32.mrb[19].mxu0  ;;  %2556 = vmatmul.mubr.msk.f32.vlgmr.msra.gmra.mrb[10].mxu1 %vm1470_vm10, %v1720_v47  ;;  %v1793_v47 = vld [vmem:[#allocation10 + $0x1d8] sm:$0xff] }
 0x79b   : > { %2801 = vmatpush1.bf16.msra.mxu1 %v2800_v39  ;;  %1939 = vmatprep.mubr.f32.mxu1 %v3310_v29  ;;  %v2834_v39 = vpack.c.bf16 %v1789_v37, %v1787_v36  ;;  %v2838_v49 = vpack.c.bf16 %v1793_v47, %v1791_v46  ;;  %v1790_v50 = vld [vmem:[#allocation10 + $0x1c0] sm:$0xff] }
 0x79c   : > { %2803 = vmatprep.subr.bf16.mxu1 %v2802_v44  ;;  %v1786_v44 = vld [vmem:[#allocation10 + $0x1a0] sm:$0xff] }
 0x79d   : > { %v1725_v59 = vpop.f32.mrb[20].mxu0  ;;  %v2836_v48 = vpack.c.bf16 %v1788_v45, %v1786_v44 }
 0x79e   : > { %v1727_v61 = vpop.f32.mrb[21].mxu0 }
 0x79f   : > { %2805 = vmatpush1.bf16.msra.mxu1 %v2804_v51  ;;  %v1792_v51 = vld [vmem:[#allocation10 + $0x1d0] sm:$0xff] }
 0x7a0   : > { %2807 = vmatprep.subr.bf16.mxu1 %v2806_v52  ;;  %v1795_v52 = vld [vmem:[#allocation10 + $0x1e8] sm:$0xff]  ;;  %v2840_v55 = vpack.c.bf16 %v1792_v51, %v1790_v50  ;;  %v1796_v61 = vld [vmem:[#allocation10 + $0x1f0] sm:$0xff] }
 0x7a1   : > { %v3871_v40 = vpop.f32.mrb[22].mxu0  ;;  %v2842_v57 = vpack.c.bf16 %v1797_v54, %v1795_v52 }
 0x7a2   : > { %v1732_v42 = vpop.f32.mrb[23].mxu0 }
 0x7a3   : > { %2809 = vmatpush1.bf16.msra.mxu1 %v2808_v62  ;;  %v2844_v62 = vpack.c.bf16 %v1796_v61, %v1794_v58 }
 0x7a4   : > { %2811 = vmatprep.subr.bf16.mxu1 %v2810_v63 }
 0x7a7   : > { %2813 = vmatpush1.bf16.msra.mxu1 %v2812_v43 }
 0x7a8   : > { %2815 = vmatprep.subr.bf16.mxu1 %v2814_v5 }
 0x7aa   : > { %2557 = vmatmul.mubr.msk.f32.vlgmr.msra.gmra.mrb[10].mxu1 %vm1470_vm10, %v1715_v35  ;;  %v1784_v35 = vld [vmem:[#allocation10 + $0x190] sm:$0xff] }
 0x7ab   : > { %2817 = vmatpush1.bf16.msra.mxu1 %v2816_v10  ;;  %2013 = vmatprep.mubr.f32.mxu1 %v3310_v29  ;;  %v2832_v38 = vpack.c.bf16 %v1784_v35, %v1782_v33 }
 0x7ac   : > { %2819 = vmatprep.subr.bf16.mxu1 %v2818_v11 }
 0x7af   : > { %2821 = vmatpush1.bf16.msra.mxu1 %v2820_v14  ;;  %v3903_v14 = vld [vmem:[#allocation13] sm:$0xff] }
 0x7b0   : > { %2823 = vmatprep.subr.bf16.mxu1 %v2822_v15  ;;  %v3905_v15 = vld [vmem:[#allocation13 + $0x8] sm:$0xff]  ;;  %v2137_v16 = vrot.slane %v3903_v14, %v3736_v41  ;;  %v2155_v32 = vrot.slane %v3903_v14, %v3750_v60  ;;  %v2191_v44 = vrot.slane %v3903_v14, %v3786_v1  ;;  %v2201_v50 = vrot.slane %v3903_v14, %v3720_v20 }
 0x7b1   : > { %v2141_v18 = vrot.slane %v3905_v15, %v3736_v41  ;;  %v2159_v19 = vrot.slane %v3905_v15, %v3750_v60  ;;  %v2177_v60 = vrot.slane %v3905_v15, %v3768_v31  ;;  %v2195_v45 = vrot.slane %v3905_v15, %v3786_v1 }
 0x7b2   : > { %v2220_v1 = vrot.slane %v3903_v14, %v3743_v53  ;;  %v2224_v54 = vrot.slane %v3905_v15, %v3743_v53  ;;  %v2262_v53 = vrot.slane %v3905_v15, %v3779_v56 }
 0x7b3   : > { %2825 = vmatpush1.bf16.msra.mxu1 %v2824_v23 }
 0x7b4   : > { %2827 = vmatprep.subr.bf16.mxu1 %v2826_v24 }
 0x7b7   : > { %2829 = vmatpush1.bf16.msra.mxu1 %v2828_v28 }
 0x7b8   : > { %2831 = vmatprep.subr.bf16.mxu1 %v2830_v30 }
 0x7ba   : > { %2558 = vmatmul.mubr.msk.f32.vlgmr.msra.gmra.mrb[10].mxu1 %vm1470_vm10, %v1725_v59 }
 0x7bb   : > { %2833 = vmatpush1.bf16.msra.mxu1 %v2832_v38  ;;  %2089 = vmatprep.mubr.f32.mxu1 %v3310_v29 }
 0x7bc   : > { %2835 = vmatprep.subr.bf16.mxu1 %v2834_v39  ;;  %v2173_v39 = vrot.slane %v3903_v14, %v3768_v31  ;;  %v2205_v31 = vrot.slane %v3905_v15, %v3720_v20 }
 0x7bf   : > { %2837 = vmatpush1.bf16.msra.mxu1 %v2836_v48 }
 0x7c0   : > { %2839 = vmatprep.subr.bf16.mxu1 %v2838_v49 }
 0x7c3   : > { %2841 = vmatpush1.bf16.msra.mxu1 %v2840_v55 }
 0x7c4   : > { %2843 = vmatprep.subr.bf16.mxu1 %v2842_v57 }
 0x7c7   : > { %2845 = vmatpush1.bf16.msra.mxu1 %v2844_v62 }
 0x7ca   : > { %2559 = vmatmul.mubr.msk.f32.vlgmr.msra.gmra.mrb[10].mxu1 %vm1470_vm10, %v3871_v40 }
 0x89d   : > { %v2091_v59 = vpop.f32.mrb[10].mxu1 }
 0x89e   : > { %v2093_v63 = vpop.f32.mrb[11].mxu1 }
 0x89f   : > { %v2098_v0 = vadd.f32 %v2093_v63, %v2091_v59 }
 0x8a1   : > { %2099 = vadd.xlane.f32.xlu0 %v2098_v0 }
 0x92e   : > { %v2100_v2 = vpop.xlane.xlu0 %2099 }
 0x92f   : > { %v2102_v3 = vmul.f32 0.00390625, %v2100_v2 }
 0x931   : > { %v2103_v4 = vsub.f32 %v2091_v59, %v2102_v3  ;;  %v2104_v42 = vsub.f32 %v2093_v63, %v2102_v3 }
 0x933   : > { %v2105_v43 = vmul.f32 %v2103_v4, %v2103_v4  ;;  %v2106_v5 = vmul.f32 %v2104_v42, %v2104_v42 }
 0x935   : > { %v2107_v6 = vadd.f32 %v2106_v5, %v2105_v43  ;;  %v2243_v5 = vrot.slane %v3905_v15, %v3761_v22 }
 0x937   : > { %2108 = vadd.xlane.f32.xlu1 %v2107_v6 }
 0x9c4   : > { %v2109_v7 = vpop.xlane.xlu1 %2108 }
 0x9c5   : > { %v2110_v8 = vmul.f32 0.00390625, %v2109_v7 }
 0x9c7   : > { %v2111_v9 = vadd.f32 1e-05, %v2110_v8 }
 0x9c9   : > { %3019 = vrsqrt.f32 %v2111_v9 }
 0x9d3   : > { %v3020_v10 = vpop.eup %3019 }
 0x9d4   : > { %v2113_v11 = vmul.f32 %v3020_v10, %v2103_v4  ;;  %v2114_v34 = vmul.f32 %v3020_v10, %v2104_v42 }
 0x9d6   : > { %v3879_v40 = vmax.f32 %v2113_v11, 0.0  ;;  %v3881_v17 = vmax.f32 %v2114_v34, 0.0 }
 0x9d8   : > { %2127 = vrot.lane.b32.xlu1 %v3881_v17, %s3311_s29  ;;  %2125 = vrot.lane.b32.xlu0 %v3879_v40, %s3311_s29  ;;  %v2206_v0 = vmul.f32 %v2201_v50, %v3879_v40  ;;  %v2207_v2 = vmul.f32 %v2205_v31, %v3881_v17 }
 0x9dc   : > { %2146 = vrot.lane.b32.xlu1 %v3881_v17, %s3312_s11  ;;  %2144 = vrot.lane.b32.xlu0 %v3879_v40, %s3312_s11 }
 0x9e0   : > { %2164 = vrot.lane.b32.xlu1 %v3881_v17, %s3313_s22  ;;  %2162 = vrot.lane.b32.xlu0 %v3879_v40, %s3313_s22 }
 0x9e4   : > { %2182 = vrot.lane.b32.xlu1 %v3881_v17, %s3301_s12  ;;  %2180 = vrot.lane.b32.xlu0 %v3879_v40, %s3301_s12 }
 0x9e8   : > { %2208 = vrot.lane.b32.xlu1 %v3879_v40, %s3296_s20  ;;  %2210 = vrot.lane.b32.xlu0 %v3881_v17, %s3296_s20  ;;  %s2566_s20 = sshll.u32 %s4001_s16, 5 }
 0x9e9   : > { %s473_s15 = scalar_lea.vmem %s3971_s10, %s2566_s20 }
 0x9ec   : > { %2248 = vrot.lane.b32.xlu1 %v3881_v17, %s3314_s3  ;;  %2229 = vrot.lane.b32.xlu0 %v3881_v17, %s3315_s30 }
 0x9f0   : > { %2246 = vrot.lane.b32.xlu1 %v3879_v40, %s3314_s3  ;;  %2227 = vrot.lane.b32.xlu0 %v3879_v40, %s3315_s30 }
 0x9f4   : > { %2265 = vrot.lane.b32.xlu1 %v3879_v40, %s3316_s17  ;;  %2267 = vrot.lane.b32.xlu0 %v3881_v17, %s3316_s17  ;;  %v2258_v17 = vrot.slane %v3903_v14, %v3779_v56  ;;  %v2560_v56 = vld [vmem:[#allocation13 + $0x10] ss:$0 sm:$0xff] }
 0xa4a   : > { %v2128_v12 = vpop.permute.xlu1 %2127  ;;  %v2126_v13 = vpop.permute.xlu0 %2125 }
 0xa4b   : > { %v2130_v23 = vsel %vm2129_vm4, %v2126_v13, %v2128_v12  ;;  %v2133_v24 = vsel %vm2129_vm4, 0.0, %v2126_v13  ;;  %v2239_v12 = vrot.slane %v3903_v14, %v3761_v22 }
 0xa4c   : > { %v2142_v28 = vmul.f32 %v2137_v16, %v2133_v24  ;;  %v2143_v30 = vmul.f32 %v2141_v18, %v2130_v23  ;;  %v2561_v24 = vld [vmem:[#allocation13 + $0x18] ss:$0 sm:$0xff] }
 0xa4e   : > { %v2147_v25 = vpop.permute.xlu1 %2146  ;;  %v2145_v21 = vpop.permute.xlu0 %2144 }
 0xa4f   : > { %v2148_v26 = vsel %vm603_vm0, %v2145_v21, %v2147_v25  ;;  %v2151_v27 = vsel %vm603_vm0, 0.0, %v2145_v21  ;;  %vm2212_vm0 = vcmask 1039360  }
 0xa50   : > { %v2160_v33 = vmul.f32 %v2155_v32, %v2151_v27  ;;  %v2161_v35 = vmul.f32 %v2159_v19, %v2148_v26 }
 0xa52   : > { %v2848_v36 = vpack.c.bf16 %v2160_v33, %v2142_v28  ;;  %v2165_v41 = vpop.permute.xlu1 %2164  ;;  %v2163_v37 = vpop.permute.xlu0 %2162  ;;  %v2846_v38 = vpack.c.bf16 %v2161_v35, %v2143_v30  ;;  %v2117_v30 = vld [vmem:[#allocation12] sm:$0xff]  ;;  %v2118_v33 = vld [vmem:[#allocation12 + $0x8] sm:$0xf] }
 0xa53   : > { %v2166_v46 = vsel %vm811_vm3, %v2163_v37, %v2165_v41  ;;  %v2169_v47 = vsel %vm811_vm3, 0.0, %v2163_v37  ;;  %vm2250_vm3 = vcmask 916480  }
 0xa54   : > { %2847 = vmatprep.subr.bf16.mxu0 %v2846_v38  ;;  %v2178_v55 = vmul.f32 %v2173_v39, %v2169_v47  ;;  %v2179_v57 = vmul.f32 %v2177_v60, %v2166_v46 }
 0xa55   : > { %2849 = vmatpush1.bf16.msra.mxu0 %v2848_v36 }
 0xa56   : > { %v2183_v48 = vpop.permute.xlu1 %2182  ;;  %v2181_v49 = vpop.permute.xlu0 %2180 }
 0xa57   : > { %v2184_v51 = vsel %vm778_vm8, %v2181_v49, %v2183_v48  ;;  %v2187_v52 = vsel %vm778_vm8, 0.0, %v2181_v49 }
 0xa58   : > { %v2196_v58 = vmul.f32 %v2191_v44, %v2187_v52  ;;  %v2197_v61 = vmul.f32 %v2195_v45, %v2184_v51 }
 0xa5a   : > { %v2852_v62 = vpack.c.bf16 %v2196_v58, %v2178_v55  ;;  %v2209_v59 = vpop.permute.xlu1 %2208  ;;  %v2211_v63 = vpop.permute.xlu0 %2210  ;;  %v2850_v20 = vpack.c.bf16 %v2197_v61, %v2179_v57 }
 0xa5b   : > { %v2213_v3 = vsel %vm2212_vm0, %v2209_v59, %v2211_v63  ;;  %v2216_v4 = vsel %vm2212_vm0, %v2211_v63, 0.0 }
 0xa5c   : > { %v2225_v42 = vmul.f32 %v2220_v1, %v2213_v3  ;;  %v2226_v43 = vmul.f32 %v2224_v54, %v2216_v4  ;;  %2851 = vmatprep.subr.bf16.mxu0 %v2850_v20 }
 0xa5d   : > { %2853 = vmatpush1.bf16.msra.mxu0 %v2852_v62 }
 0xa5e   : > { %v2856_v6 = vpack.c.bf16 %v2225_v42, %v2206_v0  ;;  %v2249_v7 = vpop.permute.xlu1 %2248  ;;  %v2230_v8 = vpop.permute.xlu0 %2229  ;;  %v2854_v9 = vpack.c.bf16 %v2226_v43, %v2207_v2 }
 0xa5f   : > { %v2254_v10 = vsel %vm2250_vm3, %v2249_v7, 0.0  ;;  %v2235_v11 = vsel %vm2231_vm5, %v2230_v8, 0.0 }
 0xa60   : > { %v2264_v34 = vmul.f32 %v2262_v53, %v2254_v10  ;;  %v2245_v40 = vmul.f32 %v2243_v5, %v2235_v11  ;;  %2855 = vmatprep.subr.bf16.mxu0 %v2854_v9 }
 0xa61   : > { %2857 = vmatpush1.bf16.msra.mxu0 %v2856_v6 }
 0xa62   : > { %v2247_v13 = vpop.permute.xlu1 %2246  ;;  %v2228_v15 = vpop.permute.xlu0 %2227  ;;  %v2858_v16 = vpack.c.bf16 %v2264_v34, %v2245_v40 }
 0xa63   : > { %v2251_v18 = vsel %vm2250_vm3, %v2247_v13, %v2249_v7  ;;  %v2232_v32 = vsel %vm2231_vm5, %v2228_v15, %v2230_v8 }
 0xa64   : > { %v2263_v19 = vmul.f32 %v2258_v17, %v2251_v18  ;;  %v2244_v23 = vmul.f32 %v2239_v12, %v2232_v32  ;;  %2859 = vmatprep.subr.bf16.mxu0 %v2858_v16 }
 0xa66   : > { %v2860_v25 = vpack.c.bf16 %v2263_v19, %v2244_v23  ;;  %v2266_v21 = vpop.permute.xlu1 %2265  ;;  %v2268_v26 = vpop.permute.xlu0 %2267 }
 0xa67   : > { %v2270_v27 = vsel %vm2269_vm6, %v2266_v21, %v2268_v26  ;;  %v2273_v28 = vsel %vm2269_vm6, %v2268_v26, 0.0 }
 0xa68   : > { %v2283_v22 = vmul.f32 %v2561_v24, %v2273_v28  ;;  %2861 = vmatpush1.bf16.msra.mxu0 %v2860_v25  ;;  %v2282_v14 = vmul.f32 %v2560_v56, %v2270_v27 }
 0xa6a   : > { %2307 = vmatprep.subr.mxu0 %v2283_v22 }
 0xa6c   : > { %2308 = vmatpush1.msra.mxu0 %v2282_v14 }
 0xa6d   : > { %2562 = vmatmul.mubr.msk.f32.vlgmr.msra.gmra.mrb[24].mxu0 %vm2284_vm7, %v2117_v30 }
 0xa6e   : > { %2361 = vmatprep.mubr.f32.mxu0 %v3310_v29 }
 0xa71   : > { %2563 = vmatmul.mubr.msk.f32.gmra.mrb[26].mxu0 %vm2284_vm7, %v2118_v33 }
 0xb40   : > { %v2357_v35 = vpop.f32.mrb[24].mxu0 }
 0xb41   : > { %3021 = vtanh.f32 %v2357_v35  ;;  %v2359_v36 = vpop.f32.mrb[25].mxu0 }
 0xb42   : > { %3023 = vtanh.f32 %v2359_v36 }
 0xb44   : > { %v2363_v41 = vpop.f32.mrb[26].mxu0 }
 0xb45   : > { %3025 = vtanh.f32 %v2363_v41  ;;  %v2365_v37 = vpop.f32.mrb[27].mxu0 }
 0xb46   : > { %3027 = vtanh.f32 %v2365_v37 }
 0xb4b   : > { %v3022_v38 = vpop.eup %3021 }
 0xb4c   : > { %v3024_v39 = vpop.eup %3023  ;;  %2372 = vst [vmem:[%s473_s15] sm:$0xff] %v3022_v38 }
 0xb4d   : > { %2373 = vst [vmem:[%s473_s15 + $0x8] sm:$0xff] %v3024_v39 }
 0xb4f   : > { %v3026_v29 = vpop.eup %3025 }
 0xb50   : > { %v3028_v60 = vpop.eup %3027  ;;  %2374 = vst [vmem:[%s473_s15 + $0x10] sm:$0xf] %v3026_v29 }
 0xb51   : > { %2375 = vst [vmem:[%s473_s15 + $0x18] sm:$0xf] %v3028_v60 }
 0xb52 PF: > { %s25_s13 = sadd.s32 1, %s3279_s13  }
 0xb53   : > { %p22_p9 = scmp.ge.s32.totalorder %s25_s13, 4  }
 0xb55   :  { %24 = sbr.rel (!%p22_p9) target bundleno = 7 (0x7), region = 123 }
 0xb5c   :  { %2397 = vsyncpa [#allocation3], 1 }
 0xb5d   :  { %2399 = vsyncpa [#allocation3 + $0x1], 1 }
 0xb5e   :  { %2400 = vsyncpa [#allocation5], 1 }
 0xb5f   :  { %2401 = vsyncpa [#allocation8], 1 }
 0xb60   :  { %2402 = vsyncpa [#allocation11], 1 }
 0xb61   :  { %2403 = vsyncpa [#allocation14], 1 }

</bundles_post_ra>
